<compile_context>
chip_gen: v6e
topology: v6e:2x2x1
jax: 0.10.0
libtpu: 0.0.40
codegen_flags: <defaults>
</compile_context>

<pallas_src>
import functools

import jax
import jax.numpy as jnp
from jax.experimental import pallas as pl
from jax.experimental.pallas import tpu as pltpu

LANE = 128        # vreg lane width / tiling granularity for all matmul dims
MAX_TK = 1024     # layer-1 contraction tile upper bound (ImageNet-scale n_x)
HIDDEN = 800      # 'mlp_mnist' hidden width (module definition)


def _round_up(a, m):
    return (a + m - 1) // m * m


def _nx_tiling(n_x):
    """Balanced k-tiling of the input dim: (<128 lanes of zero pad per k-tile)."""
    nx_lane = _round_up(n_x, LANE)
    nk = pl.cdiv(nx_lane, MAX_TK)
    tk = _round_up(pl.cdiv(n_x, nk), LANE)
    return nk, tk, nk * tk                      # (#k tiles, k tile, padded n_x)


def _chip_tuning():
    """(max batch tile, vmem limit bytes, megacore?) per TPU generation."""
    try:
        kind = jax.devices()[0].device_kind.lower()
    except Exception:
        kind = ""
    if "v5" in kind:          # v5e: already compute-bound at TM=512
        return 512, 32 << 20, False
    if "v6" in kind:          # v6e: bigger TM beats the HBM roofline on w1
        return 2048, 48 << 20, False
    if "v7" in kind:          # v7x: 64 MiB VMEM/TC, 2 TensorCores
        return 1536, 40 << 20, True
    return 1024, 40 << 20, False


def _mlp_kernel_single(x_ref, w1_ref, b1_ref, w2_ref, b2_ref, w3_ref, b3_ref,
                       out_ref):
    """Whole n_x fits in one k tile: fully fused 3-layer MLP, no scratch."""
    xb = x_ref[...].astype(w1_ref.dtype)
    h1 = jnp.dot(xb, w1_ref[...], preferred_element_type=jnp.float32) + b1_ref[...]
    h1 = jnp.maximum(h1, 0.0)
    h2 = jnp.dot(h1.astype(w2_ref.dtype), w2_ref[...],
                 preferred_element_type=jnp.float32) + b2_ref[...]
    h2 = jnp.maximum(h2, 0.0)
    out = jnp.dot(h2.astype(w3_ref.dtype), w3_ref[...],
                  preferred_element_type=jnp.float32) + b3_ref[...]
    out_ref[...] = out.astype(out_ref.dtype)


def _mlp_kernel_multi(x_ref, w1_ref, b1_ref, w2_ref, b2_ref, w3_ref, b3_ref,
                      out_ref, h1_acc):
    """n_x streams over the second grid axis; h1 accumulates in f32 scratch."""
    k = pl.program_id(1)
    part = jnp.dot(x_ref[...].astype(w1_ref.dtype), w1_ref[...],
                   preferred_element_type=jnp.float32)

    @pl.when(k == 0)
    def _():
        h1_acc[...] = part                       # write, not zero-fill + add

    @pl.when(k > 0)
    def _():
        h1_acc[...] += part

    @pl.when(k == pl.num_programs(1) - 1)
    def _():
        h1 = jnp.maximum(h1_acc[...] + b1_ref[...], 0.0)
        h2 = jnp.dot(h1.astype(w2_ref.dtype), w2_ref[...],
                     preferred_element_type=jnp.float32) + b2_ref[...]
        h2 = jnp.maximum(h2, 0.0)
        out = jnp.dot(h2.astype(w3_ref.dtype), w3_ref[...],
                      preferred_element_type=jnp.float32) + b3_ref[...]
        out_ref[...] = out.astype(out_ref.dtype)


def prepare_params(params):
    """Pad weights/biases once to lane-friendly shapes; matmul operands bf16,
    biases stay f32. Zero padding keeps the math exact."""
    w1, b1, w2, b2, w3, b3 = (params[k] for k in
                              ("w1", "b1", "w2", "b2", "w3", "b3"))
    n_x, hidden = w1.shape
    out_dim = w3.shape[1]
    _, _, n_x_p = _nx_tiling(n_x)
    h_p = _round_up(hidden, LANE)            # 800 -> 896 (was 1024)
    out_p = _round_up(out_dim, LANE)

    def pad(a, shape):
        return jnp.pad(a, [(0, s - d) for d, s in zip(a.shape, shape)])

    return {
        "w1": pad(w1, (n_x_p, h_p)).astype(jnp.bfloat16),
        "b1": pad(b1, (1, h_p)).astype(jnp.float32),
        "w2": pad(w2, (h_p, h_p)).astype(jnp.bfloat16),
        "b2": pad(b2, (1, h_p)).astype(jnp.float32),
        "w3": pad(w3, (h_p, out_p)).astype(jnp.bfloat16),
        "b3": pad(b3, (1, out_p)).astype(jnp.float32),
    }


@functools.partial(jax.jit, static_argnames=("n_x", "out_dim"))
def deterministic_encoder_forward(x, pparams, *, n_x, out_dim):
    """Pallas forward: x with prod(trailing dims) == n_x per row, pparams from
    prepare_params(). Returns (B, out_dim) == (B, 2K), f32."""
    x2 = x.reshape(-1, n_x)                               # == x.view(-1, n_x)
    B = x2.shape[0]
    w1, b1, w2, b2, w3, b3 = (pparams[k] for k in
                              ("w1", "b1", "w2", "b2", "w3", "b3"))
    n_x_p, h_p = w1.shape
    out_p = w3.shape[1]
    nk, TK, n_x_p_check = _nx_tiling(n_x)
    assert n_x_p_check == n_x_p, "pparams were prepared for a different n_x"

    max_tm, vmem_limit, megacore = _chip_tuning()
    TM = min(max_tm, _round_up(B, 16))                    # bf16 sublane tile = 16
    if megacore and B > 16:
        # keep >= 2 batch tiles so both v7x TensorCores get work
        TM = min(TM, _round_up(pl.cdiv(B, 2), 16))
    B_p = _round_up(B, TM)
    n_i = B_p // TM

    # Only materialize a padded copy of x when padding is actually needed;
    # otherwise stream f32 x directly and cast the tile in-kernel.
    if B_p != B or n_x_p != n_x:
        xp = jnp.pad(x2.astype(jnp.bfloat16), ((0, B_p - B), (0, n_x_p - n_x)))
    else:
        xp = x2

    def _call(use_single_buffer):
        def spec(shape, index_map, resident=False):
            if resident and use_single_buffer and hasattr(pl, "Buffered"):
                return pl.BlockSpec(shape, index_map,
                                    pipeline_mode=pl.Buffered(1))
            return pl.BlockSpec(shape, index_map)

        if nk == 1:
            grid = (n_i,)
            kernel = _mlp_kernel_single
            in_specs = [
                pl.BlockSpec((TM, TK), lambda i: (i, 0)),            # x tile
                spec((TK, h_p), lambda i: (0, 0), resident=True),    # w1 resident
                spec((1, h_p), lambda i: (0, 0), resident=True),     # b1
                spec((h_p, h_p), lambda i: (0, 0), resident=True),   # w2
                spec((1, h_p), lambda i: (0, 0), resident=True),     # b2
                spec((h_p, out_p), lambda i: (0, 0), resident=True), # w3
                spec((1, out_p), lambda i: (0, 0), resident=True),   # b3
            ]
            out_spec = pl.BlockSpec((TM, out_p), lambda i: (i, 0))
            scratch = []
            dims = ("parallel",)
        else:
            grid = (n_i, nk)
            kernel = _mlp_kernel_multi
            in_specs = [
                pl.BlockSpec((TM, TK), lambda i, k: (i, k)),             # x tile
                pl.BlockSpec((TK, h_p), lambda i, k: (k, 0)),            # w1 streams
                spec((1, h_p), lambda i, k: (0, 0), resident=True),      # b1
                spec((h_p, h_p), lambda i, k: (0, 0), resident=True),    # w2
                spec((1, h_p), lambda i, k: (0, 0), resident=True),      # b2
                spec((h_p, out_p), lambda i, k: (0, 0), resident=True),  # w3
                spec((1, out_p), lambda i, k: (0, 0), resident=True),    # b3
            ]
            out_spec = pl.BlockSpec((TM, out_p), lambda i, k: (i, 0))
            scratch = [pltpu.VMEM((TM, h_p), jnp.float32)]               # h1 acc
            dims = ("parallel", "arbitrary")

        return pl.pallas_call(
            kernel,
            out_shape=jax.ShapeDtypeStruct((B_p, out_p), jnp.float32),
            grid=grid,
            in_specs=in_specs,
            out_specs=out_spec,
            scratch_shapes=scratch,
            compiler_params=pltpu.CompilerParams(
                dimension_semantics=dims,
                vmem_limit_bytes=vmem_limit,
            ),
        )(xp, w1, b1, w2, b2, w3, b3)

    try:
        out = _call(True)
    except Exception:
        # pipeline_mode / pl.Buffered(1) not supported by this jax build.
        out = _call(False)

    return out[:B, :out_dim]


def init_params(key, n_x, K, hidden=HIDDEN):
    """Init matching torch.nn.Linear default U(-1/sqrt(fan_in), +); weights are
    stored (in_features, out_features) so y = x @ W + b."""
    ks = jax.random.split(key, 6)

    def lin(kw, kb, fan_in, fan_out):
        bound = 1.0 / jnp.sqrt(jnp.float32(fan_in))
        w = jax.random.uniform(kw, (fan_in, fan_out), jnp.float32, -bound, bound)
        b = jax.random.uniform(kb, (1, fan_out), jnp.float32, -bound, bound)
        return w, b

    w1, b1 = lin(ks[0], ks[1], n_x, hidden)
    w2, b2 = lin(ks[2], ks[3], hidden, hidden)
    w3, b3 = lin(ks[4], ks[5], hidden, 2 * K)
    return {"w1": w1, "b1": b1, "w2": w2, "b2": b2, "w3": w3, "b3": b3}


def _reference_checks(out, x2d, params):
    # Check 1 (tight): plain-JAX reference using the same bf16 matmul precision.
    bf = lambda a: a.astype(jnp.bfloat16)
    h1 = jnp.maximum(jnp.dot(bf(x2d), bf(params["w1"]),
                             preferred_element_type=jnp.float32) + params["b1"], 0.0)
    h2 = jnp.maximum(jnp.dot(bf(h1), bf(params["w2"]),
                             preferred_element_type=jnp.float32) + params["b2"], 0.0)
    ref_bf16 = jnp.dot(bf(h2), bf(params["w3"]),
                       preferred_element_type=jnp.float32) + params["b3"]
    assert jnp.allclose(out, ref_bf16, atol=2e-3, rtol=2e-3)

    # Check 2 (loose): the module's full-f32 math (bf16 quantization tolerance).
    h1f = jnp.maximum(x2d @ params["w1"] + params["b1"], 0.0)
    h2f = jnp.maximum(h1f @ params["w2"] + params["b2"], 0.0)
    ref_f32 = h2f @ params["w3"] + params["b3"]
    assert jnp.allclose(out, ref_f32, atol=1e-1, rtol=5e-2)


if __name__ == "__main__":
    key = jax.random.PRNGKey(0)
    k_x, k_p, k_x2, k_p2 = jax.random.split(key, 4)

    # ---- Test 1: small module-consistent shapes (single-k kernel path) ----
    B, C, Hh, Ww = 8, 1, 16, 16
    n_x = C * Hh * Ww          # 256
    K = 16                     # output width 2K = 32
    x = jax.random.normal(k_x, (B, C, Hh, Ww), dtype=jnp.float32)
    params = init_params(k_p, n_x, K)
    pparams = prepare_params(params)

    mean_t = deterministic_encoder_forward(x, pparams, n_x=n_x, out_dim=2 * K)
    mean_t = jax.block_until_ready(mean_t)
    assert mean_t.shape == (B, 2 * K)
    _reference_checks(mean_t, x.reshape(-1, n_x), params)

    # ---- Test 2: n_x > MAX_TK exercises the multi-k accumulator path ----
    B2, n_x2, K2 = 4, 1100, 8
    x2 = jax.random.normal(k_x2, (B2, n_x2), dtype=jnp.float32)
    params2 = init_params(k_p2, n_x2, K2)
    pparams2 = prepare_params(params2)

    out2 = deterministic_encoder_forward(x2, pparams2, n_x=n_x2, out_dim=2 * K2)
    out2 = jax.block_until_ready(out2)
    assert out2.shape == (B2, 2 * K2)
    _reference_checks(out2, x2, params2)

    print("KERNEL_OK")
</pallas_src>

<mosaic_0001>
module attributes {stable_mosaic.version = 11 : i64} {
  func.func @_mlp_kernel_single(%arg0: i32, %arg1: memref<16x256xbf16, #tpu.memory_space<vmem>>, %arg2: memref<256x896xbf16, #tpu.memory_space<vmem>>, %arg3: memref<1x896xf32, #tpu.memory_space<vmem>>, %arg4: memref<896x896xbf16, #tpu.memory_space<vmem>>, %arg5: memref<1x896xf32, #tpu.memory_space<vmem>>, %arg6: memref<896x128xbf16, #tpu.memory_space<vmem>>, %arg7: memref<1x128xf32, #tpu.memory_space<vmem>>, %arg8: memref<16x128xf32, #tpu.memory_space<vmem>>) attributes {dimension_semantics = [#tpu.dimension_semantics<parallel>], iteration_bounds = array<i64: 1>, scalar_prefetch = 0 : i64, scratch_operands = 0 : i64, tpu.core_type = #tpu.core_type<tc>, window_params = [{transform_indices = @transform_0, window_bounds = array<i64: 16, 256>}, {pipeline_mode = #tpu.pipeline_mode<synchronous>, transform_indices = @transform_1, window_bounds = array<i64: 256, 896>}, {pipeline_mode = #tpu.pipeline_mode<synchronous>, transform_indices = @transform_2, window_bounds = array<i64: 1, 896>}, {pipeline_mode = #tpu.pipeline_mode<synchronous>, transform_indices = @transform_3, window_bounds = array<i64: 896, 896>}, {pipeline_mode = #tpu.pipeline_mode<synchronous>, transform_indices = @transform_4, window_bounds = array<i64: 1, 896>}, {pipeline_mode = #tpu.pipeline_mode<synchronous>, transform_indices = @transform_5, window_bounds = array<i64: 896, 128>}, {pipeline_mode = #tpu.pipeline_mode<synchronous>, transform_indices = @transform_6, window_bounds = array<i64: 1, 128>}, {transform_indices = @transform_7, window_bounds = array<i64: 16, 128>}]} {
    %c0 = arith.constant 0 : index
    %c0_0 = arith.constant 0 : index
    %0 = vector.load %arg1[%c0, %c0_0] : memref<16x256xbf16, #tpu.memory_space<vmem>>, vector<16x256xbf16>
    %c0_1 = arith.constant 0 : index
    %c0_2 = arith.constant 0 : index
    %1 = vector.load %arg2[%c0_1, %c0_2] : memref<256x896xbf16, #tpu.memory_space<vmem>>, vector<256x896xbf16>
    %cst = arith.constant dense<0.000000e+00> : vector<16x896xf32>
    %2 = tpu.matmul %0, %1, %cst {dimension_numbers = #tpu.dot_dimension_numbers<[1], [0], [0], [1], [0, 0, 1, 1], [], []>} : vector<16x256xbf16>, vector<256x896xbf16>, vector<16x896xf32> -> vector<16x896xf32>
    %c0_3 = arith.constant 0 : index
    %c0_4 = arith.constant 0 : index
    %3 = vector.load %arg3[%c0_3, %c0_4] : memref<1x896xf32, #tpu.memory_space<vmem>>, vector<1x896xf32>
    %4 = vector.broadcast %3 : vector<1x896xf32> to vector<16x896xf32>
    %5 = arith.addf %2, %4 : vector<16x896xf32>
    %cst_5 = arith.constant 0.000000e+00 : f32
    %6 = vector.broadcast %cst_5 : f32 to vector<16x896xf32>
    %7 = arith.maximumf %5, %6 : vector<16x896xf32>
    %8 = arith.truncf %7 : vector<16x896xf32> to vector<16x896xbf16>
    %c0_6 = arith.constant 0 : index
    %c0_7 = arith.constant 0 : index
    %9 = vector.load %arg4[%c0_6, %c0_7] : memref<896x896xbf16, #tpu.memory_space<vmem>>, vector<896x896xbf16>
    %cst_8 = arith.constant dense<0.000000e+00> : vector<16x896xf32>
    %10 = tpu.matmul %8, %9, %cst_8 {dimension_numbers = #tpu.dot_dimension_numbers<[1], [0], [0], [1], [0, 0, 1, 1], [], []>} : vector<16x896xbf16>, vector<896x896xbf16>, vector<16x896xf32> -> vector<16x896xf32>
    %c0_9 = arith.constant 0 : index
    %c0_10 = arith.constant 0 : index
    %11 = vector.load %arg5[%c0_9, %c0_10] : memref<1x896xf32, #tpu.memory_space<vmem>>, vector<1x896xf32>
    %12 = vector.broadcast %11 : vector<1x896xf32> to vector<16x896xf32>
    %13 = arith.addf %10, %12 : vector<16x896xf32>
    %cst_11 = arith.constant 0.000000e+00 : f32
    %14 = vector.broadcast %cst_11 : f32 to vector<16x896xf32>
    %15 = arith.maximumf %13, %14 : vector<16x896xf32>
    %16 = arith.truncf %15 : vector<16x896xf32> to vector<16x896xbf16>
    %c0_12 = arith.constant 0 : index
    %c0_13 = arith.constant 0 : index
    %17 = vector.load %arg6[%c0_12, %c0_13] : memref<896x128xbf16, #tpu.memory_space<vmem>>, vector<896x128xbf16>
    %cst_14 = arith.constant dense<0.000000e+00> : vector<16x128xf32>
    %18 = tpu.matmul %16, %17, %cst_14 {dimension_numbers = #tpu.dot_dimension_numbers<[1], [0], [0], [1], [0, 0, 1, 1], [], []>} : vector<16x896xbf16>, vector<896x128xbf16>, vector<16x128xf32> -> vector<16x128xf32>
    %c0_15 = arith.constant 0 : index
    %c0_16 = arith.constant 0 : index
    %19 = vector.load %arg7[%c0_15, %c0_16] : memref<1x128xf32, #tpu.memory_space<vmem>>, vector<1x128xf32>
    %20 = vector.broadcast %19 : vector<1x128xf32> to vector<16x128xf32>
    %21 = arith.addf %18, %20 : vector<16x128xf32>
    %c0_17 = arith.constant 0 : index
    %c0_18 = arith.constant 0 : index
    %22 = vector.load %arg8[%c0_17, %c0_18] : memref<16x128xf32, #tpu.memory_space<vmem>>, vector<16x128xf32>
    tpu.vector_store %arg8[%c0_17, %c0_18], %21 {strides = array<i32>} : memref<16x128xf32, #tpu.memory_space<vmem>>, vector<16x128xf32>,
    return
  }
  func.func @transform_0(%arg0: i32) -> (i32, i32) {
    %c0_i32 = arith.constant 0 : i32
    %c0_i32_0 = arith.constant 0 : i32
    return %arg0, %c0_i32 : i32, i32
  }
  func.func @transform_1(%arg0: i32) -> (i32, i32) {
    %c0_i32 = arith.constant 0 : i32
    %c0_i32_0 = arith.constant 0 : i32
    %c0_i32_1 = arith.constant 0 : i32
    return %c0_i32, %c0_i32_0 : i32, i32
  }
  func.func @transform_2(%arg0: i32) -> (i32, i32) {
    %c0_i32 = arith.constant 0 : i32
    %c0_i32_0 = arith.constant 0 : i32
    %c0_i32_1 = arith.constant 0 : i32
    return %c0_i32, %c0_i32_0 : i32, i32
  }
  func.func @transform_3(%arg0: i32) -> (i32, i32) {
    %c0_i32 = arith.constant 0 : i32
    %c0_i32_0 = arith.constant 0 : i32
    %c0_i32_1 = arith.constant 0 : i32
    return %c0_i32, %c0_i32_0 : i32, i32
  }
  func.func @transform_4(%arg0: i32) -> (i32, i32) {
    %c0_i32 = arith.constant 0 : i32
    %c0_i32_0 = arith.constant 0 : i32
    %c0_i32_1 = arith.constant 0 : i32
    return %c0_i32, %c0_i32_0 : i32, i32
  }
  func.func @transform_5(%arg0: i32) -> (i32, i32) {
    %c0_i32 = arith.constant 0 : i32
    %c0_i32_0 = arith.constant 0 : i32
    %c0_i32_1 = arith.constant 0 : i32
    return %c0_i32, %c0_i32_0 : i32, i32
  }
  func.func @transform_6(%arg0: i32) -> (i32, i32) {
    %c0_i32 = arith.constant 0 : i32
    %c0_i32_0 = arith.constant 0 : i32
    %c0_i32_1 = arith.constant 0 : i32
    return %c0_i32, %c0_i32_0 : i32, i32
  }
  func.func @transform_7(%arg0: i32) -> (i32, i32) {
    %c0_i32 = arith.constant 0 : i32
    %c0_i32_0 = arith.constant 0 : i32
    return %arg0, %c0_i32 : i32, i32
  }
}

</mosaic_0001>

<bundles_post_ra>
// kernel: deterministic_encoder_forward.1
= control target key start
LH: loop header
LB: loop body
LE: loop exit
PB: predicated region body
PF: predicated region fallthrough
CT: control target
= control target key end

     0   :  { %12 = vsyncpa [#allocation3], 0  ;;  %s6824_s0 = inlined_call_operand.vmem [shape: bf16[16,256], index: 0, kind: input, shape index: {}]   ;;  %s6825_s1 = inlined_call_operand.hbm [shape: bf16[256,896], index: 1, kind: input, shape index: {}]   ;;  %s6826_s2 = inlined_call_operand.hbm [shape: f32[1,896], index: 2, kind: input, shape index: {}]   ;;  %s6827_s3 = inlined_call_operand.hbm [shape: bf16[896,896], index: 3, kind: input, shape index: {}]   ;;  %s6828_s4 = inlined_call_operand.hbm [shape: f32[1,896], index: 4, kind: input, shape index: {}]   ;;  %s6829_s5 = inlined_call_operand.hbm [shape: bf16[896,128], index: 5, kind: input, shape index: {}]   ;;  %s6830_s6 = inlined_call_operand.hbm [shape: f32[1,128], index: 6, kind: input, shape index: {}]   ;;  %s6831_s7 = inlined_call_operand.vmem [shape: f32[16,128], index: 7, kind: output, shape index: {}]  }
   0x1   :  { %13 = vsyncpa [#allocation5], 0 }
   0x2   :  { %14 = vsyncpa [#allocation8], 0 }
   0x3   :  { %15 = vsyncpa [#allocation11], 0  ;;  %s6573_s24 = smov [#allocation4]   ;;  %s6574_s26 = smov [#allocation7]  }
   0x4   :  { %s36_s25 = sshll.u32 %s6573_s24, 4  ;;  %s58_s27 = sshll.u32 %s6574_s26, 4  ;;  %s37_s25 = int_to_ptr.vmem [resolvable:$true] %s36_s25  ;;  %s59_s27 = int_to_ptr.vmem [resolvable:$true] %s58_s27 }
   0x5   :  { %s6453_s28 = scalar_lea.vmem %s37_s25, 112  ;;  %s6457_s29 = scalar_lea.vmem %s37_s25, 128 }
   0x6   :  { %p6454_p0 = scmp.ne.s32.totalorder %s37_s25, %s6453_s28  ;;  %p6458_p1 = scmp.lt.s32.totalorder %s37_s25, %s37_s25 }
   0x7   :  { %p6459_p2 = scmp.lt.s32.totalorder %s6457_s29, %s6453_s28 }
   0x9   :  { %p6460_p3 = por %p6459_p2, %p6458_p1 }
   0xb   :  { %p6461_p4 = pnand %p6460_p3, %p6454_p0 }
   0xd   :  { %6464 = shalt.err (!%p6461_p4)
}
   0xe   :  { %39 = dma.hbm_to_vmem [thread:$0]  %s6826_s2, 112, %s37_s25, [#allocation5]  }
   0xf   :  { %s6473_s9 = scalar_lea.vmem %s59_s27, 112  ;;  %s6477_s10 = scalar_lea.vmem %s59_s27, 128 }
  0x10   :  { %p6474_p5 = scmp.ne.s32.totalorder %s59_s27, %s6473_s9  ;;  %p6478_p6 = scmp.lt.s32.totalorder %s59_s27, %s59_s27 }
  0x11   :  { %p6479_p7 = scmp.lt.s32.totalorder %s6477_s10, %s6473_s9 }
  0x13   :  { %p6480_p8 = por %p6479_p7, %p6478_p6 }
  0x15   :  { %p6481_p9 = pnand %p6480_p8, %p6474_p5 }
  0x17   :  { %6484 = shalt.err (!%p6481_p9)
}
  0x18   :  { %61 = dma.hbm_to_vmem [thread:$0]  %s6828_s4, 112, %s59_s27, [#allocation8]  }
  0x19   :  { %s6575_s13 = smov [#allocation2]  }
  0x1a   :  { %s23_s14 = sshll.u32 %s6575_s13, 4  ;;  %s24_s14 = int_to_ptr.vmem [resolvable:$true] %s23_s14 }
  0x1b   :  { %s6493_s15 = scalar_lea.vmem %s24_s14, 14336  ;;  %p6498_p11 = scmp.lt.s32.totalorder %s24_s14, %s24_s14 }
  0x1c   :  { %p6494_p10 = scmp.ne.s32.totalorder %s24_s14, %s6493_s15  ;;  %p6499_p12 = scmp.lt.s32.totalorder %s6493_s15, %s6493_s15 }
  0x1e   :  { %p6500_p13 = por %p6499_p12, %p6498_p11 }
  0x20   :  { %p6501_p0 = pnand %p6500_p13, %p6494_p10 }
  0x22   :  { %6504 = shalt.err (!%p6501_p0)
}
  0x23   :  { %s6576_s2 = smov 448   ;;  %s6577_s16 = smov 28  }
  0x24   :  { %29 = dma.hbm_to_vmem [thread:$0]  %s6825_s1, 14336, %s24_s14, [#allocation3], %s6576_s2, %s6576_s2, %s6577_s16  }
  0x25   :  { %s6578_s19 = smov [#allocation6]   ;;  %s6579_s4 = smov [#allocation9]  }
  0x26   :  { %s45_s20 = sshll.u32 %s6578_s19, 4  ;;  %s67_s21 = sshll.u32 %s6579_s4, 4  ;;  %s46_s20 = int_to_ptr.vmem [resolvable:$true] %s45_s20  ;;  %s68_s21 = int_to_ptr.vmem [resolvable:$true] %s67_s21 }
  0x27   :  { %s6513_s22 = scalar_lea.vmem %s46_s20, 50176  ;;  %p6518_p2 = scmp.lt.s32.totalorder %s46_s20, %s46_s20 }
  0x28   :  { %p6514_p1 = scmp.ne.s32.totalorder %s46_s20, %s6513_s22  ;;  %p6519_p3 = scmp.lt.s32.totalorder %s6513_s22, %s6513_s22 }
  0x2a   :  { %p6520_p4 = por %p6519_p3, %p6518_p2 }
  0x2c   :  { %p6521_p5 = pnand %p6520_p4, %p6514_p1 }
  0x2e   :  { %6524 = shalt.err (!%p6521_p5)
}
  0x2f   :  { %51 = dma.hbm_to_vmem [thread:$0]  %s6827_s3, 50176, %s46_s20, [#allocation5], %s6576_s2, %s6576_s2, %s6577_s16  }
  0x30   :  { %s6533_s25 = scalar_lea.vmem %s68_s21, 7168  ;;  %p6538_p7 = scmp.lt.s32.totalorder %s68_s21, %s68_s21 }
  0x31   :  { %p6534_p6 = scmp.ne.s32.totalorder %s68_s21, %s6533_s25  ;;  %p6539_p8 = scmp.lt.s32.totalorder %s6533_s25, %s6533_s25 }
  0x33   :  { %p6540_p9 = por %p6539_p8, %p6538_p7 }
  0x35   :  { %p6541_p10 = pnand %p6540_p9, %p6534_p6 }
  0x37   :  { %6544 = shalt.err (!%p6541_p10)
}
  0x38   :  { %s6580_s1 = smov 64   ;;  %s6581_s26 = smov 4  }
  0x39   :  { %73 = dma.hbm_to_vmem [thread:$0]  %s6829_s5, 7168, %s68_s21, [#allocation8], %s6580_s1, %s6580_s1, %s6581_s26  }
  0x3a   :  { %s6582_s29 = smov [#allocation10]  }
  0x3b   :  { %s80_s30 = sshll.u32 %s6582_s29, 4  ;;  %s81_s30 = int_to_ptr.vmem [resolvable:$true] %s80_s30 }
  0x3c   :  { %s6553_s8 = scalar_lea.vmem %s81_s30, 16  ;;  %s6557_s3 = scalar_lea.vmem %s81_s30, 32 }
  0x3d   :  { %p6554_p11 = scmp.ne.s32.totalorder %s81_s30, %s6553_s8  ;;  %p6558_p12 = scmp.lt.s32.totalorder %s81_s30, %s81_s30 }
  0x3e   :  { %p6559_p13 = scmp.lt.s32.totalorder %s6557_s3, %s6553_s8 }
  0x40   :  { %p6560_p0 = por %p6559_p13, %p6558_p12 }
  0x42   :  { %p6561_p1 = pnand %p6560_p0, %p6554_p11 }
  0x44   :  { %6564 = shalt.err (!%p6561_p1)
}
  0x45   :  { %83 = dma.hbm_to_vmem [thread:$0]  %s6830_s6, 16, %s81_s30, [#allocation11]  }
  0x46   :  { %6565 = dma.done.wait [#allocation3], 14336  }
  0x47   :  { %6566 = vsyncadd [#allocation3], 4294952960 }
  0x48   :  { %6567 = dma.done.wait [#allocation5], 50288  }
  0x49   :  { %6568 = vsyncadd [#allocation5], 4294917008 }
  0x4a   :  { %6569 = dma.done.wait [#allocation8], 7280  }
  0x4b   :  { %6570 = vsyncadd [#allocation8], 4294960016 }
  0x4c   :  { %6571 = dma.done.wait [#allocation11], 16  }
  0x4d   :  { %6572 = vsyncadd [#allocation11], 4294967280  ;;  %v5666_v0 = vld [vmem:[#allocation2 + $0x18c] ss:$28 sps:$4 sm:$0xff]   ;;  %v5668_v1 = vld [vmem:[#allocation2 + $0x194] ss:$28 sps:$4 sm:$0xff]  }
  0x4e   :  { %856 = vmatprep.subr.bf16.mxu0 %v5666_v0  ;;  %v5670_v2 = vld [vmem:[#allocation2 + $0x188] ss:$28 sps:$4 sm:$0xff]   ;;  %v5671_v3 = vld [vmem:[#allocation2 + $0x190] ss:$28 sps:$4 sm:$0xff]   ;;  %899 = vmatprep.subr.bf16.mxu1 %v5668_v1  ;;  %v5674_v5 = vld [vmem:[#allocation2 + $0x15c] ss:$28 sps:$4 sm:$0xff]  }
  0x4f   :  { %v5672_v4 = vld [vmem:[#allocation2 + $0x154] ss:$28 sps:$4 sm:$0xff]   ;;  %857 = vmatpush1.bf16.msra.mxu0 %v5670_v2  ;;  %900 = vmatpush1.bf16.msra.mxu1 %v5671_v3  ;;  %v5678_v8 = vld [vmem:[#allocation2 + $0x11c] ss:$28 sps:$4 sm:$0xff]   ;;  %v5680_v9 = vld [vmem:[#allocation2 + $0x124] ss:$28 sps:$4 sm:$0xff]  }
  0x50   :  { %v5676_v6 = vld [vmem:[#allocation2 + $0x150] ss:$28 sps:$4 sm:$0xff]   ;;  %858 = vmatprep.subr.bf16.mxu0 %v5672_v4  ;;  %v5677_v7 = vld [vmem:[#allocation2 + $0x158] ss:$28 sps:$4 sm:$0xff]   ;;  %901 = vmatprep.subr.bf16.mxu1 %v5674_v5  ;;  %v5683_v11 = vld [vmem:[#allocation2 + $0x120] ss:$28 sps:$4 sm:$0xff]  }
  0x51   :  { %v5682_v10 = vld [vmem:[#allocation2 + $0x118] ss:$28 sps:$4 sm:$0xff]   ;;  %v5684_v12 = vld [vmem:[#allocation2 + $0xe4] ss:$28 sps:$4 sm:$0xff]   ;;  %v5686_v13 = vld [vmem:[#allocation2 + $0xec] ss:$28 sps:$4 sm:$0xff]  }
  0x52   :  { %v5688_v14 = vld [vmem:[#allocation2 + $0xe0] ss:$28 sps:$4 sm:$0xff]   ;;  %v5689_v15 = vld [vmem:[#allocation2 + $0xe8] ss:$28 sps:$4 sm:$0xff]   ;;  %v5692_v17 = vld [vmem:[#allocation2 + $0xb4] ss:$28 sps:$4 sm:$0xff]  }
  0x53   :  { %859 = vmatpush1.bf16.msra.mxu0 %v5676_v6  ;;  %902 = vmatpush1.bf16.msra.mxu1 %v5677_v7  ;;  %v5690_v16 = vld [vmem:[#allocation2 + $0xac] ss:$28 sps:$4 sm:$0xff]   ;;  %v5696_v20 = vld [vmem:[#allocation2 + $0x74] ss:$28 sps:$4 sm:$0xff]   ;;  %v5698_v21 = vld [vmem:[#allocation2 + $0x7c] ss:$28 sps:$4 sm:$0xff]  }
  0x54   :  { %860 = vmatprep.subr.bf16.mxu0 %v5678_v8  ;;  %903 = vmatprep.subr.bf16.mxu1 %v5680_v9  ;;  %v5694_v18 = vld [vmem:[#allocation2 + $0xa8] ss:$28 sps:$4 sm:$0xff]   ;;  %v5695_v19 = vld [vmem:[#allocation2 + $0xb0] ss:$28 sps:$4 sm:$0xff]   ;;  %v5701_v23 = vld [vmem:[#allocation2 + $0x78] ss:$28 sps:$4 sm:$0xff]  }
  0x55   :  { %v5700_v22 = vld [vmem:[#allocation2 + $0x70] ss:$28 sps:$4 sm:$0xff]   ;;  %v5702_v24 = vld [vmem:[#allocation2 + $0x3c] ss:$28 sps:$4 sm:$0xff]   ;;  %v5704_v25 = vld [vmem:[#allocation2 + $0x44] ss:$28 sps:$4 sm:$0xff]  }
  0x56   :  { %v5706_v26 = vld [vmem:[#allocation2 + $0x38] ss:$28 sps:$4 sm:$0xff]   ;;  %v5707_v27 = vld [vmem:[#allocation2 + $0x40] ss:$28 sps:$4 sm:$0xff]   ;;  %v5710_v29 = vld [vmem:[#allocation2 + $0xc] ss:$28 sps:$4 sm:$0xff]  }
  0x57   :  { %861 = vmatpush1.bf16.msra.mxu0 %v5682_v10  ;;  %904 = vmatpush1.bf16.msra.mxu1 %v5683_v11  ;;  %v5708_v28 = vld [vmem:[#allocation2 + $0x4] ss:$28 sps:$4 sm:$0xff]   ;;  %v5714_v32 = vld [vmem:[#allocation2 + $0x34c] ss:$28 sps:$4 sm:$0xff]   ;;  %v5716_v33 = vld [vmem:[#allocation2 + $0x354] ss:$28 sps:$4 sm:$0xff]  }
  0x58   :  { %862 = vmatprep.subr.bf16.mxu0 %v5684_v12  ;;  %905 = vmatprep.subr.bf16.mxu1 %v5686_v13  ;;  %v5712_v30 = vld [vmem:[#allocation2] ss:$28 sps:$4 sm:$0xff]   ;;  %v5713_v31 = vld [vmem:[#allocation2 + $0x8] ss:$28 sps:$4 sm:$0xff]   ;;  %v5719_v35 = vld [vmem:[#allocation2 + $0x350] ss:$28 sps:$4 sm:$0xff]  }
  0x59   :  { %v5718_v34 = vld [vmem:[#allocation2 + $0x348] ss:$28 sps:$4 sm:$0xff]   ;;  %v5720_v36 = vld [vmem:[#allocation2 + $0x314] ss:$28 sps:$4 sm:$0xff]   ;;  %v5722_v37 = vld [vmem:[#allocation2 + $0x31c] ss:$28 sps:$4 sm:$0xff]  }
  0x5a   :  { %v5724_v38 = vld [vmem:[#allocation2 + $0x310] ss:$28 sps:$4 sm:$0xff]   ;;  %v5725_v39 = vld [vmem:[#allocation2 + $0x318] ss:$28 sps:$4 sm:$0xff]   ;;  %v5728_v41 = vld [vmem:[#allocation2 + $0x2e4] ss:$28 sps:$4 sm:$0xff]  }
  0x5b   :  { %863 = vmatpush1.bf16.msra.mxu0 %v5688_v14  ;;  %906 = vmatpush1.bf16.msra.mxu1 %v5689_v15  ;;  %v5726_v40 = vld [vmem:[#allocation2 + $0x2dc] ss:$28 sps:$4 sm:$0xff]   ;;  %v5732_v44 = vld [vmem:[#allocation2 + $0x2a4] ss:$28 sps:$4 sm:$0xff]   ;;  %v5734_v45 = vld [vmem:[#allocation2 + $0x2ac] ss:$28 sps:$4 sm:$0xff]  }
  0x5c   :  { %864 = vmatprep.subr.bf16.mxu0 %v5690_v16  ;;  %907 = vmatprep.subr.bf16.mxu1 %v5692_v17  ;;  %v5730_v42 = vld [vmem:[#allocation2 + $0x2d8] ss:$28 sps:$4 sm:$0xff]   ;;  %v5731_v43 = vld [vmem:[#allocation2 + $0x2e0] ss:$28 sps:$4 sm:$0xff]   ;;  %v5737_v47 = vld [vmem:[#allocation2 + $0x2a8] ss:$28 sps:$4 sm:$0xff]  }
  0x5d   :  { %v5736_v46 = vld [vmem:[#allocation2 + $0x2a0] ss:$28 sps:$4 sm:$0xff]   ;;  %v5762_v48 = vld [vmem:[%s6824_s0 + $0x4] ss:$8 sps:$4 sm:$0xff]   ;;  %v5740_v50 = vld [vmem:[#allocation2 + $0x274] ss:$28 sps:$4 sm:$0xff]  }
  0x5e   :  { %v5738_v49 = vld [vmem:[#allocation2 + $0x26c] ss:$28 sps:$4 sm:$0xff]   ;;  %888 = vmatprep.mubr.bf16.mxu0 %v5762_v48  ;;  %931 = vmatprep.mubr.bf16.mxu1 %v5762_v48  ;;  %v5744_v53 = vld [vmem:[#allocation2 + $0x234] ss:$28 sps:$4 sm:$0xff]   ;;  %v5746_v54 = vld [vmem:[#allocation2 + $0x23c] ss:$28 sps:$4 sm:$0xff]  }
  0x5f   :  { %865 = vmatpush1.bf16.msra.mxu0 %v5694_v18  ;;  %908 = vmatpush1.bf16.msra.mxu1 %v5695_v19  ;;  %v5742_v51 = vld [vmem:[#allocation2 + $0x268] ss:$28 sps:$4 sm:$0xff]   ;;  %v5743_v52 = vld [vmem:[#allocation2 + $0x270] ss:$28 sps:$4 sm:$0xff]   ;;  %v5749_v56 = vld [vmem:[#allocation2 + $0x238] ss:$28 sps:$4 sm:$0xff]  }
  0x60   :  { %866 = vmatprep.subr.bf16.mxu0 %v5696_v20  ;;  %909 = vmatprep.subr.bf16.mxu1 %v5698_v21  ;;  %v5748_v55 = vld [vmem:[#allocation2 + $0x230] ss:$28 sps:$4 sm:$0xff]   ;;  %v5750_v57 = vld [vmem:[#allocation2 + $0x1fc] ss:$28 sps:$4 sm:$0xff]   ;;  %v5752_v58 = vld [vmem:[#allocation2 + $0x204] ss:$28 sps:$4 sm:$0xff]  }
  0x61   :  { %v5754_v59 = vld [vmem:[#allocation2 + $0x1f8] ss:$28 sps:$4 sm:$0xff]   ;;  %v5755_v60 = vld [vmem:[#allocation2 + $0x200] ss:$28 sps:$4 sm:$0xff]   ;;  %v5758_v62 = vld [vmem:[#allocation2 + $0x1cc] ss:$28 sps:$4 sm:$0xff]  }
  0x62   :  { %v5756_v61 = vld [vmem:[#allocation2 + $0x1c4] ss:$28 sps:$4 sm:$0xff]   ;;  %v5767_v2 = vld [vmem:[#allocation2 + $0x19c] ss:$28 sps:$4 sm:$0xff]   ;;  %v5777_v10 = vld [vmem:[#allocation2 + $0x12c] ss:$28 sps:$4 sm:$0xff]  }
  0x63   :  { %867 = vmatpush1.bf16.msra.mxu0 %v5700_v22  ;;  %910 = vmatpush1.bf16.msra.mxu1 %v5701_v23  ;;  %v5760_v63 = vld [vmem:[#allocation2 + $0x1c0] ss:$28 sps:$4 sm:$0xff]   ;;  %v5761_v0 = vld [vmem:[#allocation2 + $0x1c8] ss:$28 sps:$4 sm:$0xff]   ;;  %v5765_v4 = vld [vmem:[#allocation2 + $0x198] ss:$28 sps:$4 sm:$0xff]  }
  0x64   :  { %868 = vmatprep.subr.bf16.mxu0 %v5702_v24  ;;  %911 = vmatprep.subr.bf16.mxu1 %v5704_v25  ;;  %v6650_v1 = vld [vmem:[%s6824_s0] ss:$8 sps:$4 sm:$0xff]   ;;  %v5778_v11 = vld [vmem:[#allocation2 + $0x2f0] ss:$28 sps:$4 sm:$0xff]   ;;  %v5783_v15 = vld [vmem:[#allocation2 + $0x2b8] ss:$28 sps:$4 sm:$0xff]  }
  0x65   :  { %v5768_v3 = vld [vmem:[#allocation2 + $0x360] ss:$28 sps:$4 sm:$0xff]   ;;  %v5773_v7 = vld [vmem:[#allocation2 + $0x328] ss:$28 sps:$4 sm:$0xff]   ;;  %v5779_v13 = vld [vmem:[#allocation2 + $0x130] ss:$28 sps:$4 sm:$0xff]  }
  0x66   :  { %v5769_v5 = vld [vmem:[#allocation2 + $0x1a0] ss:$28 sps:$4 sm:$0xff]   ;;  %v5774_v9 = vld [vmem:[#allocation2 + $0x168] ss:$28 sps:$4 sm:$0xff]   ;;  %v5782_v14 = vld [vmem:[#allocation2 + $0xf4] ss:$28 sps:$4 sm:$0xff]  }
  0x67   :  { %869 = vmatpush1.bf16.msra.mxu0 %v5706_v26  ;;  %912 = vmatpush1.bf16.msra.mxu1 %v5707_v27  ;;  %v5772_v6 = vld [vmem:[#allocation2 + $0x164] ss:$28 sps:$4 sm:$0xff]   ;;  %v5780_v16 = vld [vmem:[#allocation2 + $0xf0] ss:$28 sps:$4 sm:$0xff]   ;;  %v5784_v17 = vld [vmem:[#allocation2 + $0xf8] ss:$28 sps:$4 sm:$0xff]  }
  0x68   :  { %870 = vmatprep.subr.bf16.mxu0 %v5708_v28  ;;  %913 = vmatprep.subr.bf16.mxu1 %v5710_v29  ;;  %v5770_v8 = vld [vmem:[#allocation2 + $0x160] ss:$28 sps:$4 sm:$0xff]   ;;  %v5775_v12 = vld [vmem:[#allocation2 + $0x128] ss:$28 sps:$4 sm:$0xff]   ;;  %v5785_v20 = vld [vmem:[#allocation2 + $0xb8] ss:$28 sps:$4 sm:$0xff]  }
  0x69   :  { %v5787_v18 = vld [vmem:[#allocation2 + $0xbc] ss:$28 sps:$4 sm:$0xff]   ;;  %v5792_v22 = vld [vmem:[#allocation2 + $0x84] ss:$28 sps:$4 sm:$0xff]   ;;  %v5797_v26 = vld [vmem:[#allocation2 + $0x4c] ss:$28 sps:$4 sm:$0xff]  }
  0x6a   :  { %v5788_v19 = vld [vmem:[#allocation2 + $0x280] ss:$28 sps:$4 sm:$0xff]   ;;  %v5793_v23 = vld [vmem:[#allocation2 + $0x248] ss:$28 sps:$4 sm:$0xff]   ;;  %v5798_v27 = vld [vmem:[#allocation2 + $0x210] ss:$28 sps:$4 sm:$0xff]  }
  0x6b   :  { %871 = vmatpush1.bf16.msra.mxu0 %v5712_v30  ;;  %914 = vmatpush1.bf16.msra.mxu1 %v5713_v31  ;;  %v5789_v21 = vld [vmem:[#allocation2 + $0xc0] ss:$28 sps:$4 sm:$0xff]   ;;  %v5794_v25 = vld [vmem:[#allocation2 + $0x88] ss:$28 sps:$4 sm:$0xff]   ;;  %v5799_v29 = vld [vmem:[#allocation2 + $0x50] ss:$28 sps:$4 sm:$0xff]  }
  0x6c   :  { %872 = vmatprep.subr.bf16.mxu0 %v5714_v32  ;;  %915 = vmatprep.subr.bf16.mxu1 %v5716_v33  ;;  %v5790_v24 = vld [vmem:[#allocation2 + $0x80] ss:$28 sps:$4 sm:$0xff]   ;;  %v5795_v28 = vld [vmem:[#allocation2 + $0x48] ss:$28 sps:$4 sm:$0xff]   ;;  %v5802_v30 = vld [vmem:[#allocation2 + $0x14] ss:$28 sps:$4 sm:$0xff]  }
  0x6d   :  { %v5803_v31 = vld [vmem:[#allocation2 + $0x1d8] ss:$28 sps:$4 sm:$0xff]   ;;  %v5800_v32 = vld [vmem:[#allocation2 + $0x10] ss:$28 sps:$4 sm:$0xff]   ;;  %vm6585_vm0 = vmmov 0  }
  0x6e   :  { %v5804_v33 = vld [vmem:[#allocation2 + $0x18] ss:$28 sps:$4 sm:$0xff]  }
  0x6f   :  { %873 = vmatpush2.bf16.msra.mxu0 %v5718_v34  ;;  %916 = vmatpush2.bf16.msra.mxu1 %v5719_v35  ;;  %v5807_v34 = vld [vmem:[#allocation2 + $0x35c] ss:$28 sps:$4 sm:$0xff]   ;;  %v5831_v35 = vld [vmem:[#allocation6 + $0x18c] ss:$28 sps:$4 sm:$0xff]  }
  0x70   :  { %874 = vmatprep.subr.bf16.mxu0 %v5720_v36  ;;  %917 = vmatprep.subr.bf16.mxu1 %v5722_v37  ;;  %v5805_v36 = vld [vmem:[#allocation2 + $0x358] ss:$28 sps:$4 sm:$0xff]   ;;  %v5810_v37 = vld [vmem:[#allocation2 + $0x324] ss:$28 sps:$4 sm:$0xff]  }
  0x73   :  { %875 = vmatpush2.bf16.msra.mxu0 %v5724_v38  ;;  %918 = vmatpush2.bf16.msra.mxu1 %v5725_v39  ;;  %v5829_v38 = vld [vmem:[#allocation6 + $0x188] ss:$28 sps:$4 sm:$0xff]   ;;  %v5837_v39 = vld [vmem:[#allocation6 + $0x154] ss:$28 sps:$4 sm:$0xff]  }
  0x74   :  { %876 = vmatprep.subr.bf16.mxu0 %v5726_v40  ;;  %919 = vmatprep.subr.bf16.mxu1 %v5728_v41  ;;  %v5808_v40 = vld [vmem:[#allocation2 + $0x320] ss:$28 sps:$4 sm:$0xff]   ;;  %v5813_v41 = vld [vmem:[#allocation2 + $0x2ec] ss:$28 sps:$4 sm:$0xff]  }
  0x77   :  { %877 = vmatpush2.bf16.msra.mxu0 %v5730_v42  ;;  %920 = vmatpush2.bf16.msra.mxu1 %v5731_v43  ;;  %v5835_v42 = vld [vmem:[#allocation6 + $0x150] ss:$28 sps:$4 sm:$0xff]   ;;  %v5843_v43 = vld [vmem:[#allocation6 + $0x11c] ss:$28 sps:$4 sm:$0xff]  }
  0x78   :  { %878 = vmatprep.subr.bf16.mxu0 %v5732_v44  ;;  %921 = vmatprep.subr.bf16.mxu1 %v5734_v45  ;;  %v5811_v44 = vld [vmem:[#allocation2 + $0x2e8] ss:$28 sps:$4 sm:$0xff]   ;;  %v5816_v45 = vld [vmem:[#allocation2 + $0x2b4] ss:$28 sps:$4 sm:$0xff]  }
  0x7b   :  { %879 = vmatpush2.bf16.msra.mxu0 %v5736_v46  ;;  %922 = vmatpush2.bf16.msra.mxu1 %v5737_v47  ;;  %v5841_v46 = vld [vmem:[#allocation6 + $0x118] ss:$28 sps:$4 sm:$0xff]   ;;  %v5849_v47 = vld [vmem:[#allocation6 + $0xe4] ss:$28 sps:$4 sm:$0xff]  }
  0x7c   :  { %880 = vmatprep.subr.bf16.mxu0 %v5738_v49  ;;  %923 = vmatprep.subr.bf16.mxu1 %v5740_v50  ;;  %v5819_v49 = vld [vmem:[#allocation2 + $0x27c] ss:$28 sps:$4 sm:$0xff]   ;;  %v5847_v50 = vld [vmem:[#allocation6 + $0xe0] ss:$28 sps:$4 sm:$0xff]  }
  0x7f   :  { %881 = vmatpush2.bf16.msra.mxu0 %v5742_v51  ;;  %924 = vmatpush2.bf16.msra.mxu1 %v5743_v52  ;;  %v5855_v51 = vld [vmem:[#allocation6 + $0xac] ss:$28 sps:$4 sm:$0xff]  }
  0x80   :  { %882 = vmatprep.subr.bf16.mxu0 %v5744_v53  ;;  %925 = vmatprep.subr.bf16.mxu1 %v5746_v54  ;;  %v5817_v52 = vld [vmem:[#allocation2 + $0x278] ss:$28 sps:$4 sm:$0xff]   ;;  %v5822_v53 = vld [vmem:[#allocation2 + $0x244] ss:$28 sps:$4 sm:$0xff]   ;;  %v5853_v54 = vld [vmem:[#allocation6 + $0xa8] ss:$28 sps:$4 sm:$0xff]  }
  0x83   :  { %883 = vmatpush2.bf16.msra.mxu0 %v5748_v55  ;;  %926 = vmatpush2.bf16.msra.mxu1 %v5749_v56  ;;  %v5861_v55 = vld [vmem:[#allocation6 + $0x74] ss:$28 sps:$4 sm:$0xff]  }
  0x84   :  { %884 = vmatprep.subr.bf16.mxu0 %v5750_v57  ;;  %927 = vmatprep.subr.bf16.mxu1 %v5752_v58  ;;  %v5820_v56 = vld [vmem:[#allocation2 + $0x240] ss:$28 sps:$4 sm:$0xff]   ;;  %v5825_v57 = vld [vmem:[#allocation2 + $0x20c] ss:$28 sps:$4 sm:$0xff]   ;;  %v5859_v58 = vld [vmem:[#allocation6 + $0x70] ss:$28 sps:$4 sm:$0xff]  }
  0x87   :  { %885 = vmatpush2.bf16.msra.mxu0 %v5754_v59  ;;  %928 = vmatpush2.bf16.msra.mxu1 %v5755_v60  ;;  %v5867_v59 = vld [vmem:[#allocation6 + $0x3c] ss:$28 sps:$4 sm:$0xff]  }
  0x88   :  { %886 = vmatprep.subr.bf16.mxu0 %v5756_v61  ;;  %929 = vmatprep.subr.bf16.mxu1 %v5758_v62  ;;  %v5823_v60 = vld [vmem:[#allocation2 + $0x208] ss:$28 sps:$4 sm:$0xff]   ;;  %v5865_v61 = vld [vmem:[#allocation6 + $0x38] ss:$28 sps:$4 sm:$0xff]   ;;  %v5828_v62 = vld [vmem:[#allocation2 + $0x1d4] ss:$28 sps:$4 sm:$0xff]  }
  0x8b   :  { %887 = vmatpush2.bf16.msra.mxu0 %v5760_v63  ;;  %930 = vmatpush2.bf16.msra.mxu1 %v5761_v0  ;;  %v5873_v63 = vld [vmem:[#allocation6 + $0x4] ss:$28 sps:$4 sm:$0xff]  }
  0x8c   :  { %942 = vmatprep.subr.bf16.mxu0 %v5767_v2  ;;  %5441 = vmatprep.subr.bf16.mxu1 %v5768_v3  ;;  %v5826_v0 = vld [vmem:[#allocation2 + $0x1d0] ss:$28 sps:$4 sm:$0xff]   ;;  %v5871_v2 = vld [vmem:[#allocation6] ss:$28 sps:$4 sm:$0xff]  }
  0x8d   :  { %v5834_v3 = vld [vmem:[#allocation6 + $0x50c] ss:$28 sps:$4 sm:$0xff]  }
  0x8e   :  { %889 = vmatmul.mubr.bf16.vlgmr.msra.gmra.mxu0 %v6650_v1  ;;  %932 = vmatmul.mubr.bf16.vlgmr.msra.gmra.mxu1 %v6650_v1 }
  0x8f   :  { %943 = vmatpush1.bf16.msra.mxu0 %v5765_v4  ;;  %5442 = vmatpush3.bf16.msra.mxu1 %v5769_v5  ;;  %v5879_v4 = vld [vmem:[#allocation6 + $0x34c] ss:$28 sps:$4 sm:$0xff]  }
  0x90   :  { %944 = vmatprep.subr.bf16.mxu0 %v5772_v6  ;;  %5443 = vmatprep.subr.bf16.mxu1 %v5773_v7  ;;  %v5832_v5 = vld [vmem:[#allocation6 + $0x508] ss:$28 sps:$4 sm:$0xff]   ;;  %v5840_v7 = vld [vmem:[#allocation6 + $0x4d4] ss:$28 sps:$4 sm:$0xff]  }
  0x91   :  { %1017 = vmatprep.mubr.bf16.mxu1 %v5762_v48  ;;  %974 = vmatprep.mubr.bf16.mxu0 %v5762_v48  ;;  %v5814_v48 = vld [vmem:[#allocation2 + $0x2b0] ss:$28 sps:$4 sm:$0xff]  }
  0x92   :  { %v5877_v6 = vld [vmem:[#allocation6 + $0x348] ss:$28 sps:$4 sm:$0xff]  }
  0x93   :  { %945 = vmatpush1.bf16.msra.mxu0 %v5770_v8  ;;  %5444 = vmatpush3.bf16.msra.mxu1 %v5774_v9  ;;  %v5885_v8 = vld [vmem:[#allocation6 + $0x314] ss:$28 sps:$4 sm:$0xff]  }
  0x94   :  { %946 = vmatprep.subr.bf16.mxu0 %v5777_v10  ;;  %5445 = vmatprep.subr.bf16.mxu1 %v5778_v11  ;;  %v5838_v9 = vld [vmem:[#allocation6 + $0x4d0] ss:$28 sps:$4 sm:$0xff]   ;;  %v5846_v10 = vld [vmem:[#allocation6 + $0x49c] ss:$28 sps:$4 sm:$0xff]  }
  0x95   :  { %v5883_v11 = vld [vmem:[#allocation6 + $0x310] ss:$28 sps:$4 sm:$0xff]  }
  0x97   :  { %947 = vmatpush1.bf16.msra.mxu0 %v5775_v12  ;;  %5446 = vmatpush3.bf16.msra.mxu1 %v5779_v13  ;;  %v5891_v12 = vld [vmem:[#allocation6 + $0x2dc] ss:$28 sps:$4 sm:$0xff]  }
  0x98   :  { %948 = vmatprep.subr.bf16.mxu0 %v5782_v14  ;;  %5447 = vmatprep.subr.bf16.mxu1 %v5783_v15  ;;  %v5844_v13 = vld [vmem:[#allocation6 + $0x498] ss:$28 sps:$4 sm:$0xff]   ;;  %v5852_v14 = vld [vmem:[#allocation6 + $0x464] ss:$28 sps:$4 sm:$0xff]  }
  0x99   :  { %v5889_v15 = vld [vmem:[#allocation6 + $0x2d8] ss:$28 sps:$4 sm:$0xff]  }
  0x9b   :  { %949 = vmatpush1.bf16.msra.mxu0 %v5780_v16  ;;  %5448 = vmatpush3.bf16.msra.mxu1 %v5784_v17  ;;  %v5897_v16 = vld [vmem:[#allocation6 + $0x2a4] ss:$28 sps:$4 sm:$0xff]  }
  0x9c   :  { %950 = vmatprep.subr.bf16.mxu0 %v5787_v18  ;;  %5449 = vmatprep.subr.bf16.mxu1 %v5788_v19  ;;  %v5850_v17 = vld [vmem:[#allocation6 + $0x460] ss:$28 sps:$4 sm:$0xff]   ;;  %v5858_v18 = vld [vmem:[#allocation6 + $0x42c] ss:$28 sps:$4 sm:$0xff]  }
  0x9d   :  { %v5895_v19 = vld [vmem:[#allocation6 + $0x2a0] ss:$28 sps:$4 sm:$0xff]  }
  0x9f   :  { %951 = vmatpush1.bf16.msra.mxu0 %v5785_v20  ;;  %5450 = vmatpush3.bf16.msra.mxu1 %v5789_v21  ;;  %v5856_v20 = vld [vmem:[#allocation6 + $0x428] ss:$28 sps:$4 sm:$0xff]   ;;  %v5864_v21 = vld [vmem:[#allocation6 + $0x3f4] ss:$28 sps:$4 sm:$0xff]  }
  0xa0   :  { %952 = vmatprep.subr.bf16.mxu0 %v5792_v22  ;;  %5451 = vmatprep.subr.bf16.mxu1 %v5793_v23  ;;  %v5901_v22 = vld [vmem:[#allocation6 + $0x268] ss:$28 sps:$4 sm:$0xff]   ;;  %v5909_v23 = vld [vmem:[#allocation6 + $0x234] ss:$28 sps:$4 sm:$0xff]  }
  0xa3   :  { %953 = vmatpush1.bf16.msra.mxu0 %v5790_v24  ;;  %5452 = vmatpush3.bf16.msra.mxu1 %v5794_v25  ;;  %v5862_v24 = vld [vmem:[#allocation6 + $0x3f0] ss:$28 sps:$4 sm:$0xff]   ;;  %v5870_v25 = vld [vmem:[#allocation6 + $0x3bc] ss:$28 sps:$4 sm:$0xff]  }
  0xa4   :  { %954 = vmatprep.subr.bf16.mxu0 %v5797_v26  ;;  %5453 = vmatprep.subr.bf16.mxu1 %v5798_v27  ;;  %v5907_v26 = vld [vmem:[#allocation6 + $0x230] ss:$28 sps:$4 sm:$0xff]   ;;  %v5915_v27 = vld [vmem:[#allocation6 + $0x1fc] ss:$28 sps:$4 sm:$0xff]  }
  0xa7   :  { %955 = vmatpush1.bf16.msra.mxu0 %v5795_v28  ;;  %5454 = vmatpush3.bf16.msra.mxu1 %v5799_v29  ;;  %v5868_v28 = vld [vmem:[#allocation6 + $0x3b8] ss:$28 sps:$4 sm:$0xff]   ;;  %v5876_v29 = vld [vmem:[#allocation6 + $0x384] ss:$28 sps:$4 sm:$0xff]  }
  0xa8   :  { %956 = vmatprep.subr.bf16.mxu0 %v5802_v30  ;;  %5455 = vmatprep.subr.bf16.mxu1 %v5803_v31  ;;  %v5913_v30 = vld [vmem:[#allocation6 + $0x1f8] ss:$28 sps:$4 sm:$0xff]   ;;  %v5921_v31 = vld [vmem:[#allocation6 + $0x1c4] ss:$28 sps:$4 sm:$0xff]  }
  0xab   :  { %957 = vmatpush1.bf16.msra.mxu0 %v5800_v32  ;;  %5456 = vmatpush3.bf16.msra.mxu1 %v5804_v33  ;;  %v5874_v32 = vld [vmem:[#allocation6 + $0x380] ss:$28 sps:$4 sm:$0xff]   ;;  %v5882_v33 = vld [vmem:[#allocation6 + $0x6cc] ss:$28 sps:$4 sm:$0xff]  }
  0xac   :  { %958 = vmatprep.subr.bf16.mxu0 %v5807_v34  ;;  %3548 = vmatprep.subr.bf16.mxu1 %v5831_v35  ;;  %v5919_v34 = vld [vmem:[#allocation6 + $0x1c0] ss:$28 sps:$4 sm:$0xff]   ;;  %v5927_v35 = vld [vmem:[#allocation6 + $0x88c] ss:$28 sps:$4 sm:$0xff]  }
  0xae   :  { %1018 = vmatmul.mubr.bf16.vlgmr.msra.gmra.mxu1 %v6650_v1 }
  0xaf   :  { %959 = vmatpush2.bf16.msra.mxu0 %v5805_v36  ;;  %3549 = vmatpush1.bf16.msra.mxu1 %v5829_v38  ;;  %v5880_v36 = vld [vmem:[#allocation6 + $0x6c8] ss:$28 sps:$4 sm:$0xff]   ;;  %v5886_v38 = vld [vmem:[#allocation6 + $0x690] ss:$28 sps:$4 sm:$0xff]  }
  0xb0   :  { %960 = vmatprep.subr.bf16.mxu0 %v5810_v37  ;;  %3550 = vmatprep.subr.bf16.mxu1 %v5837_v39  ;;  %v5888_v37 = vld [vmem:[#allocation6 + $0x694] ss:$28 sps:$4 sm:$0xff]   ;;  %v5894_v39 = vld [vmem:[#allocation6 + $0x65c] ss:$28 sps:$4 sm:$0xff]  }
  0xb3   :  { %961 = vmatpush2.bf16.msra.mxu0 %v5808_v40  ;;  %3551 = vmatpush1.bf16.msra.mxu1 %v5835_v42  ;;  %v5892_v40 = vld [vmem:[#allocation6 + $0x658] ss:$28 sps:$4 sm:$0xff]   ;;  %v5898_v42 = vld [vmem:[#allocation6 + $0x620] ss:$28 sps:$4 sm:$0xff]  }
  0xb4   :  { %962 = vmatprep.subr.bf16.mxu0 %v5813_v41  ;;  %3552 = vmatprep.subr.bf16.mxu1 %v5843_v43  ;;  %v5900_v41 = vld [vmem:[#allocation6 + $0x624] ss:$28 sps:$4 sm:$0xff]   ;;  %v5906_v43 = vld [vmem:[#allocation6 + $0x5ec] ss:$28 sps:$4 sm:$0xff]  }
  0xb7   :  { %963 = vmatpush2.bf16.msra.mxu0 %v5811_v44  ;;  %3553 = vmatpush1.bf16.msra.mxu1 %v5841_v46  ;;  %v5904_v44 = vld [vmem:[#allocation6 + $0x5e8] ss:$28 sps:$4 sm:$0xff]   ;;  %v5910_v46 = vld [vmem:[#allocation6 + $0x5b0] ss:$28 sps:$4 sm:$0xff]  }
  0xb8   :  { %964 = vmatprep.subr.bf16.mxu0 %v5816_v45  ;;  %3554 = vmatprep.subr.bf16.mxu1 %v5849_v47  ;;  %v5912_v45 = vld [vmem:[#allocation6 + $0x5b4] ss:$28 sps:$4 sm:$0xff]   ;;  %v5918_v47 = vld [vmem:[#allocation6 + $0x57c] ss:$28 sps:$4 sm:$0xff]  }
  0xbb   :  { %965 = vmatpush2.bf16.msra.mxu0 %v5814_v48  ;;  %3555 = vmatpush1.bf16.msra.mxu1 %v5847_v50  ;;  %v5916_v48 = vld [vmem:[#allocation6 + $0x578] ss:$28 sps:$4 sm:$0xff]   ;;  %v5922_v50 = vld [vmem:[#allocation6 + $0x540] ss:$28 sps:$4 sm:$0xff]  }
  0xbc   :  { %966 = vmatprep.subr.bf16.mxu0 %v5819_v49  ;;  %3556 = vmatprep.subr.bf16.mxu1 %v5855_v51  ;;  %v5924_v49 = vld [vmem:[#allocation6 + $0x544] ss:$28 sps:$4 sm:$0xff]   ;;  %v5930_v51 = vld [vmem:[#allocation6 + $0xc0c] ss:$28 sps:$4 sm:$0xff]  }
  0xbf   :  { %967 = vmatpush2.bf16.msra.mxu0 %v5817_v52  ;;  %3557 = vmatpush1.bf16.msra.mxu1 %v5853_v54  ;;  %v235_v52 = vlaneseq }
  0xc0   :  { %968 = vmatprep.subr.bf16.mxu0 %v5822_v53  ;;  %3558 = vmatprep.subr.bf16.mxu1 %v5861_v55 }
  0xc1   :  { %v6656_v53 = vshrl.u32 %v235_v52, 7  ;;  %v5963_v52 = vld [vmem:[#allocation6 + $0x73c] ss:$28 sps:$4 sm:$0xff]  }
  0xc3   :  { %969 = vmatpush2.bf16.msra.mxu0 %v5820_v56  ;;  %3559 = vmatpush1.bf16.msra.mxu1 %v5859_v58  ;;  %v245_v54 = vsub.s32 2, %v6656_v53  ;;  %v249_v55 = vsub.s32 3, %v6656_v53  ;;  %v6660_v56 = vld [vmem:[#allocation4] sm:$0xff]  ;;  %v237_v58 = vsub.s32 0, %v6656_v53 }
  0xc4   :  { %970 = vmatprep.subr.bf16.mxu0 %v5825_v57  ;;  %3560 = vmatprep.subr.bf16.mxu1 %v5867_v59  ;;  %v241_v57 = vsub.s32 1, %v6656_v53 }
  0xc5   :  { %v246_v59 = vrot.slane %v6660_v56, %v245_v54 }
  0xc7   :  { %971 = vmatpush2.bf16.msra.mxu0 %v5823_v60  ;;  %3561 = vmatpush1.bf16.msra.mxu1 %v5865_v61  ;;  %v250_v60 = vrot.slane %v6660_v56, %v249_v55 }
  0xc8   :  { %972 = vmatprep.subr.bf16.mxu0 %v5828_v62  ;;  %3562 = vmatprep.subr.bf16.mxu1 %v5873_v63  ;;  %v242_v63 = vrot.slane %v6660_v56, %v241_v57 }
  0xcb   :  { %973 = vmatpush2.bf16.msra.mxu0 %v5826_v0  ;;  %3563 = vmatpush1.bf16.msra.mxu1 %v5871_v2  ;;  %v238_v0 = vrot.slane %v6660_v56, %v237_v58 }
  0xcc   :  { %3591 = vmatprep.subr.bf16.mxu0 %v5834_v3  ;;  %3564 = vmatprep.subr.bf16.mxu1 %v5879_v4 }
  0xce   :  { %975 = vmatmul.mubr.bf16.vlgmr.msra.gmra.mxu0 %v6650_v1  ;;  %v5903_v1 = vld [vmem:[#allocation6 + $0x26c] ss:$28 sps:$4 sm:$0xff]  }
  0xcf   :  { %3592 = vmatpush1.bf16.msra.mxu0 %v5832_v5  ;;  %3565 = vmatpush2.bf16.msra.mxu1 %v5877_v6 }
  0xd0   :  { %3593 = vmatprep.subr.bf16.mxu0 %v5840_v7  ;;  %3566 = vmatprep.subr.bf16.mxu1 %v5885_v8 }
  0xd3   :  { %3594 = vmatpush1.bf16.msra.mxu0 %v5838_v9  ;;  %3567 = vmatpush2.bf16.msra.mxu1 %v5883_v11 }
  0xd4   :  { %3595 = vmatprep.subr.bf16.mxu0 %v5846_v10  ;;  %3568 = vmatprep.subr.bf16.mxu1 %v5891_v12 }
  0xd7   :  { %3596 = vmatpush1.bf16.msra.mxu0 %v5844_v13  ;;  %3569 = vmatpush2.bf16.msra.mxu1 %v5889_v15 }
  0xd8   :  { %3597 = vmatprep.subr.bf16.mxu0 %v5852_v14  ;;  %3570 = vmatprep.subr.bf16.mxu1 %v5897_v16 }
  0xdb   :  { %3598 = vmatpush1.bf16.msra.mxu0 %v5850_v17  ;;  %3571 = vmatpush2.bf16.msra.mxu1 %v5895_v19 }
  0xdc   :  { %3599 = vmatprep.subr.bf16.mxu0 %v5858_v18  ;;  %3572 = vmatprep.subr.bf16.mxu1 %v5903_v1 }
  0xdf   :  { %3600 = vmatpush1.bf16.msra.mxu0 %v5856_v20  ;;  %3573 = vmatpush2.bf16.msra.mxu1 %v5901_v22  ;;  %v5925_v22 = vld [vmem:[#allocation6 + $0x888] ss:$28 sps:$4 sm:$0xff]  }
  0xe0   :  { %3601 = vmatprep.subr.bf16.mxu0 %v5864_v21  ;;  %3574 = vmatprep.subr.bf16.mxu1 %v5909_v23  ;;  %v5928_v23 = vld [vmem:[#allocation6 + $0xc08] ss:$28 sps:$4 sm:$0xff]  }
  0xe3   :  { %3602 = vmatpush1.bf16.msra.mxu0 %v5862_v24  ;;  %3575 = vmatpush2.bf16.msra.mxu1 %v5907_v26  ;;  %v5933_v26 = vld [vmem:[#allocation6 + $0x854] ss:$28 sps:$4 sm:$0xff]  }
  0xe4   :  { %3603 = vmatprep.subr.bf16.mxu0 %v5870_v25  ;;  %3576 = vmatprep.subr.bf16.mxu1 %v5915_v27 }
  0xe7   :  { %3604 = vmatpush1.bf16.msra.mxu0 %v5868_v28  ;;  %3577 = vmatpush2.bf16.msra.mxu1 %v5913_v30  ;;  %v5936_v30 = vld [vmem:[#allocation6 + $0xbd4] ss:$28 sps:$4 sm:$0xff]  }
  0xe8   :  { %3605 = vmatprep.subr.bf16.mxu0 %v5876_v29  ;;  %3578 = vmatprep.subr.bf16.mxu1 %v5921_v31  ;;  %v5931_v31 = vld [vmem:[#allocation6 + $0x850] ss:$28 sps:$4 sm:$0xff]  }
  0xeb   :  { %3606 = vmatpush1.bf16.msra.mxu0 %v5874_v32  ;;  %3579 = vmatpush2.bf16.msra.mxu1 %v5919_v34  ;;  %v5934_v32 = vld [vmem:[#allocation6 + $0xbd0] ss:$28 sps:$4 sm:$0xff]   ;;  %v5942_v34 = vld [vmem:[#allocation6 + $0xb9c] ss:$28 sps:$4 sm:$0xff]  }
  0xec   :  { %3607 = vmatprep.subr.bf16.mxu0 %v5882_v33  ;;  %3634 = vmatprep.subr.bf16.mxu1 %v5927_v35  ;;  %v5939_v33 = vld [vmem:[#allocation6 + $0x81c] ss:$28 sps:$4 sm:$0xff]  }
  0xed   :  { %v5937_v35 = vld [vmem:[#allocation6 + $0x818] ss:$28 sps:$4 sm:$0xff]  }
  0xef   :  { %3608 = vmatpush2.bf16.msra.mxu0 %v5880_v36  ;;  %v5940_v36 = vld [vmem:[#allocation6 + $0xb98] ss:$28 sps:$4 sm:$0xff]  }
  0xf0   :  { %3609 = vmatprep.subr.bf16.mxu0 %v5888_v37  ;;  %v6583_v37 = vmov 0  }
  0xf3   :  { %3610 = vmatpush2.bf16.msra.mxu0 %v5886_v38  ;;  %v5945_v38 = vld [vmem:[#allocation6 + $0x7e4] ss:$28 sps:$4 sm:$0xff]  }
  0xf4   :  { %3611 = vmatprep.subr.bf16.mxu0 %v5894_v39  ;;  %v5948_v39 = vld [vmem:[#allocation6 + $0xb64] ss:$28 sps:$4 sm:$0xff]  }
  0xf7   :  { %3612 = vmatpush2.bf16.msra.mxu0 %v5892_v40  ;;  %v5943_v40 = vld [vmem:[#allocation6 + $0x7e0] ss:$28 sps:$4 sm:$0xff]  }
  0xf8   :  { %3613 = vmatprep.subr.bf16.mxu0 %v5900_v41  ;;  %v5946_v41 = vld [vmem:[#allocation6 + $0xb60] ss:$28 sps:$4 sm:$0xff]  }
  0xfb   :  { %3614 = vmatpush2.bf16.msra.mxu0 %v5898_v42  ;;  %v5951_v42 = vld [vmem:[#allocation6 + $0x7ac] ss:$28 sps:$4 sm:$0xff]  }
  0xfc   :  { %3615 = vmatprep.subr.bf16.mxu0 %v5906_v43  ;;  %v5954_v43 = vld [vmem:[#allocation6 + $0xb2c] ss:$28 sps:$4 sm:$0xff]  }
  0xff   :  { %3616 = vmatpush2.bf16.msra.mxu0 %v5904_v44  ;;  %v5949_v44 = vld [vmem:[#allocation6 + $0x7a8] ss:$28 sps:$4 sm:$0xff]  }
 0x100   :  { %3617 = vmatprep.subr.bf16.mxu0 %v5912_v45  ;;  %v5952_v45 = vld [vmem:[#allocation6 + $0xb28] ss:$28 sps:$4 sm:$0xff]  }
 0x103   :  { %3618 = vmatpush2.bf16.msra.mxu0 %v5910_v46  ;;  %v5957_v46 = vld [vmem:[#allocation6 + $0x774] ss:$28 sps:$4 sm:$0xff]  }
 0x104   :  { %3619 = vmatprep.subr.bf16.mxu0 %v5918_v47  ;;  %v261_v47 = vsub.s32 6, %v6656_v53 }
 0x107   :  { %3620 = vmatpush2.bf16.msra.mxu0 %v5916_v48  ;;  %v5960_v48 = vld [vmem:[#allocation6 + $0xaf4] ss:$28 sps:$4 sm:$0xff]  }
 0x108   :  { %3621 = vmatprep.subr.bf16.mxu0 %v5924_v49  ;;  %v5955_v49 = vld [vmem:[#allocation6 + $0x770] ss:$28 sps:$4 sm:$0xff]  }
 0x10b   :  { %3622 = vmatpush2.bf16.msra.mxu0 %v5922_v50  ;;  %v5958_v50 = vld [vmem:[#allocation6 + $0xaf0] ss:$28 sps:$4 sm:$0xff]  }
 0x10c   :  { %3677 = vmatprep.subr.bf16.mxu0 %v5930_v51 }
 0x14e   :  { %v890_v61 = vpop.f32.mrf.mxu0  ;;  %v933_v62 = vpop.f32.mrf.mxu1 }
 0x14f   :  { %v934_v2 = vadd.f32 %v933_v62, %v246_v59  ;;  %v891_v11 = vadd.f32 %v890_v61, %v238_v0  ;;  %v5961_v61 = vld [vmem:[#allocation6 + $0x738] ss:$28 sps:$4 sm:$0xff]  }
 0x150   :  { %v892_v3 = vpop.f32.mrf.mxu0  ;;  %v935_v4 = vpop.f32.mrf.mxu1  ;;  %v5964_v62 = vld [vmem:[#allocation6 + $0xab8] ss:$28 sps:$4 sm:$0xff]  }
 0x151   :  { %v936_v5 = vadd.f32 %v935_v4, %v250_v60  ;;  %v893_v8 = vadd.f32 %v892_v3, %v242_v63  ;;  %v1028_v12 = vmax.f32 %v934_v2, 0.0  ;;  %v1026_v24 = vmax.f32 %v891_v11, 0.0  ;;  %v5969_v3 = vld [vmem:[#allocation6 + $0x704] ss:$28 sps:$4 sm:$0xff]   ;;  %v5978_v11 = vld [vmem:[#allocation6 + $0x194] ss:$28 sps:$4 sm:$0xff]  }
 0x152   :  { %v894_v6 = vpop.f32.mrf.mxu0  ;;  %v937_v7 = vpop.f32.mrf.mxu1  ;;  %v5972_v4 = vld [vmem:[#allocation6 + $0xa84] ss:$28 sps:$4 sm:$0xff]  }
 0x153   :  { %v895_v9 = vadd.f32 %v894_v6, %v238_v0  ;;  %v938_v10 = vadd.f32 %v937_v7, %v246_v59  ;;  %v1029_v15 = vmax.f32 %v936_v5, 0.0  ;;  %v1027_v1 = vmax.f32 %v893_v8, 0.0  ;;  %v5966_v59 = vld [vmem:[#allocation6 + $0xabc] ss:$28 sps:$4 sm:$0xff]  }
 0x154   :  { %v896_v13 = vpop.f32.mrf.mxu0  ;;  %v939_v14 = vpop.f32.mrf.mxu1  ;;  %v5967_v6 = vld [vmem:[#allocation6 + $0x700] ss:$28 sps:$4 sm:$0xff]  }
 0x155   :  { %v1035_v16 = vmax.f32 %v938_v10, 0.0  ;;  %v897_v17 = vadd.f32 %v896_v13, %v242_v63  ;;  %v940_v18 = vadd.f32 %v939_v14, %v250_v60  ;;  %v1033_v19 = vmax.f32 %v895_v9, 0.0  ;;  %v5970_v9 = vld [vmem:[#allocation6 + $0xa80] ss:$28 sps:$4 sm:$0xff]   ;;  %v5975_v10 = vld [vmem:[#allocation6 + $0xa4c] ss:$28 sps:$4 sm:$0xff]  }
 0x156   :  { %v262_v60 = vrot.slane %v6660_v56, %v261_v47  ;;  %v5973_v14 = vld [vmem:[#allocation6 + $0xa48] ss:$28 sps:$4 sm:$0xff]  }
 0x157   :  { %v1034_v20 = vmax.f32 %v897_v17, 0.0  ;;  %v1036_v21 = vmax.f32 %v940_v18, 0.0  ;;  %v6676_v25 = vpack.c.bf16 %v1035_v16, %v1028_v12  ;;  %v6682_v29 = vpack.c.bf16 %v1033_v19, %v1026_v24  ;;  %v5981_v17 = vld [vmem:[#allocation6 + $0xa14] ss:$28 sps:$4 sm:$0xff]   ;;  %v5988_v24 = vld [vmem:[#allocation6 + $0x120] ss:$28 sps:$4 sm:$0xff]  }
 0x158   :  { %v5979_v19 = vld [vmem:[#allocation6 + $0xa10] ss:$28 sps:$4 sm:$0xff]  }
 0x159   :  { %v6678_v27 = vpack.c.bf16 %v1034_v20, %v1027_v1  ;;  %v6680_v28 = vpack.c.bf16 %v1036_v21, %v1029_v15  ;;  %v5976_v15 = vld [vmem:[#allocation6 + $0x190] ss:$28 sps:$4 sm:$0xff]   ;;  %v5984_v1 = vld [vmem:[#allocation6 + $0x15c] ss:$28 sps:$4 sm:$0xff]  }
 0x15a   :  { %v5982_v20 = vld [vmem:[#allocation6 + $0x158] ss:$28 sps:$4 sm:$0xff]  }
 0x15b   :  { %3580 = vmatprep.mubr.bf16.mxu1 %v6678_v27  ;;  %3623 = vmatprep.mubr.bf16.mxu0 %v6680_v28  ;;  %v5987_v21 = vld [vmem:[#allocation6 + $0x9dc] ss:$28 sps:$4 sm:$0xff]  }
 0x15c   :  { %3581 = vmatmul.mubr.bf16.vlgmr.msra.gmra.mxu1 %v6682_v29  ;;  %3624 = vmatmul.mubr.bf16.vlgmr.msra.gmra.mxu0 %v6676_v25 }
 0x15d   :  { %3635 = vmatpush1.bf16.msra.mxu1 %v5925_v22  ;;  %3678 = vmatpush1.bf16.msra.mxu0 %v5928_v23  ;;  %v5990_v22 = vld [vmem:[#allocation6 + $0x124] ss:$28 sps:$4 sm:$0xff]   ;;  %v5985_v23 = vld [vmem:[#allocation6 + $0x9d8] ss:$28 sps:$4 sm:$0xff]  }
 0x15e   :  { %3636 = vmatprep.subr.bf16.mxu1 %v5933_v26  ;;  %3679 = vmatprep.subr.bf16.mxu0 %v5936_v30  ;;  %v5993_v26 = vld [vmem:[#allocation6 + $0x9a4] ss:$28 sps:$4 sm:$0xff]   ;;  %v5996_v30 = vld [vmem:[#allocation6 + $0xec] ss:$28 sps:$4 sm:$0xff]  }
 0x15f   :  { %3709 = vmatprep.mubr.bf16.mxu0 %v6583_v37 }
 0x161   :  { %3637 = vmatpush1.bf16.msra.mxu1 %v5931_v31  ;;  %3680 = vmatpush1.bf16.msra.mxu0 %v5934_v32  ;;  %v5991_v31 = vld [vmem:[#allocation6 + $0x9a0] ss:$28 sps:$4 sm:$0xff]   ;;  %v5994_v32 = vld [vmem:[#allocation6 + $0xe8] ss:$28 sps:$4 sm:$0xff]  }
 0x162   :  { %3638 = vmatprep.subr.bf16.mxu1 %v5939_v33  ;;  %3681 = vmatprep.subr.bf16.mxu0 %v5942_v34  ;;  %v5999_v33 = vld [vmem:[#allocation6 + $0x96c] ss:$28 sps:$4 sm:$0xff]   ;;  %v6002_v34 = vld [vmem:[#allocation6 + $0xb4] ss:$28 sps:$4 sm:$0xff]  }
 0x165   :  { %3639 = vmatpush1.bf16.msra.mxu1 %v5937_v35  ;;  %3682 = vmatpush1.bf16.msra.mxu0 %v5940_v36  ;;  %v5997_v35 = vld [vmem:[#allocation6 + $0x968] ss:$28 sps:$4 sm:$0xff]   ;;  %v6000_v36 = vld [vmem:[#allocation6 + $0xb0] ss:$28 sps:$4 sm:$0xff]  }
 0x166   :  { %3640 = vmatprep.subr.bf16.mxu1 %v5945_v38  ;;  %3683 = vmatprep.subr.bf16.mxu0 %v5948_v39  ;;  %v6005_v38 = vld [vmem:[#allocation6 + $0x934] ss:$28 sps:$4 sm:$0xff]   ;;  %v253_v39 = vsub.s32 4, %v6656_v53 }
 0x169   :  { %3641 = vmatpush1.bf16.msra.mxu1 %v5943_v40  ;;  %3684 = vmatpush1.bf16.msra.mxu0 %v5946_v41  ;;  %v257_v40 = vsub.s32 5, %v6656_v53  ;;  %v6008_v41 = vld [vmem:[#allocation6 + $0x7c] ss:$28 sps:$4 sm:$0xff]  }
 0x16a   :  { %3642 = vmatprep.subr.bf16.mxu1 %v5951_v42  ;;  %3685 = vmatprep.subr.bf16.mxu0 %v5954_v43  ;;  %v6003_v42 = vld [vmem:[#allocation6 + $0x930] ss:$28 sps:$4 sm:$0xff]   ;;  %v6006_v43 = vld [vmem:[#allocation6 + $0x78] ss:$28 sps:$4 sm:$0xff]  }
 0x16d   :  { %3643 = vmatpush1.bf16.msra.mxu1 %v5949_v44  ;;  %3686 = vmatpush1.bf16.msra.mxu0 %v5952_v45  ;;  %v6011_v45 = vld [vmem:[#allocation6 + $0x8fc] ss:$28 sps:$4 sm:$0xff]  }
 0x16e   :  { %v5457_v51 = vpop.f32.mrf.mxu1  ;;  %3644 = vmatprep.subr.bf16.mxu1 %v5957_v46  ;;  %3687 = vmatprep.subr.bf16.mxu0 %v5960_v48  ;;  %v6014_v46 = vld [vmem:[#allocation6 + $0x44] ss:$28 sps:$4 sm:$0xff]   ;;  %v258_v48 = vrot.slane %v6660_v56, %v257_v40 }
 0x170   :  { %v5458_v63 = vpop.f32.mrf.mxu1 }
 0x171   :  { %v5459_v0 = vadd.f32 %v5458_v63, %v5457_v51  ;;  %3645 = vmatpush1.bf16.msra.mxu1 %v5955_v49  ;;  %3688 = vmatpush1.bf16.msra.mxu0 %v5958_v50  ;;  %v254_v49 = vrot.slane %v6660_v56, %v253_v39  ;;  %v6009_v51 = vld [vmem:[#allocation6 + $0x8f8] ss:$28 sps:$4 sm:$0xff]   ;;  %v6020_v63 = vld [vmem:[#allocation6 + $0xc] ss:$28 sps:$4 sm:$0xff]  }
 0x172   :  { %v5460_v2 = vpop.f32.mrf.mxu1  ;;  %3646 = vmatprep.subr.bf16.mxu1 %v5963_v52  ;;  %3689 = vmatprep.subr.bf16.mxu0 %v5966_v59  ;;  %v6012_v59 = vld [vmem:[#allocation6 + $0x40] ss:$28 sps:$4 sm:$0xff]  }
 0x173   :  { %v1020_v5 = vadd.f32 %v5459_v0, %v262_v60 }
 0x174   :  { %v5461_v7 = vpop.f32.mrf.mxu1 }
 0x175   :  { %v5462_v8 = vadd.f32 %v5461_v7, %v5460_v2  ;;  %3647 = vmatpush1.bf16.msra.mxu1 %v5961_v61  ;;  %3690 = vmatpush1.bf16.msra.mxu0 %v5964_v62  ;;  %v1032_v12 = vmax.f32 %v1020_v5, 0.0  ;;  %v6018_v5 = vld [vmem:[#allocation6 + $0x8] ss:$28 sps:$4 sm:$0xff]   ;;  %v6026_v7 = vld [vmem:[#allocation6 + $0x354] ss:$28 sps:$4 sm:$0xff]  }
 0x176   :  { %3648 = vmatprep.subr.bf16.mxu1 %v5969_v3  ;;  %3691 = vmatprep.subr.bf16.mxu0 %v5972_v4  ;;  %v6015_v3 = vld [vmem:[#allocation6 + $0x8c0] ss:$28 sps:$4 sm:$0xff]  }
 0x177   :  { %v1023_v13 = vadd.f32 %v5462_v8, %v262_v60  ;;  %v6017_v60 = vld [vmem:[#allocation6 + $0x8c4] ss:$28 sps:$4 sm:$0xff]  }
 0x179   :  { %v1039_v16 = vmax.f32 %v1023_v13, 0.0  ;;  %3649 = vmatpush1.bf16.msra.mxu1 %v5967_v6  ;;  %3692 = vmatpush1.bf16.msra.mxu0 %v5970_v9  ;;  %v6023_v6 = vld [vmem:[#allocation6 + $0x514] ss:$28 sps:$4 sm:$0xff]  }
 0x17a   :  { %3650 = vmatprep.subr.bf16.mxu1 %v5975_v10  ;;  %3720 = vmatprep.subr.bf16.mxu0 %v5978_v11 }
 0x17b   :  { %v6693_v18 = vpack.c.bf16 %v1039_v16, %v1032_v12  ;;  %v6021_v12 = vld [vmem:[#allocation6 + $0x510] ss:$28 sps:$4 sm:$0xff]   ;;  %v6032_v16 = vld [vmem:[#allocation6 + $0x31c] ss:$28 sps:$4 sm:$0xff]  }
 0x17d   :  { %3651 = vmatpush2.bf16.msra.mxu1 %v5973_v14  ;;  %3710 = vmatmul.mubr.bf16.vlgmr.msra.gmra.mxu0 %v6693_v18  ;;  %v6024_v14 = vld [vmem:[#allocation6 + $0x350] ss:$28 sps:$4 sm:$0xff]  }
 0x17e   :  { %3721 = vmatpush1.bf16.msra.mxu0 %v5976_v15  ;;  %3752 = vmatprep.mubr.bf16.mxu0 %v6678_v27  ;;  %v6029_v15 = vld [vmem:[#allocation6 + $0x4dc] ss:$28 sps:$4 sm:$0xff]  }
 0x17f   :  { %3652 = vmatprep.subr.bf16.mxu1 %v5981_v17  ;;  %3722 = vmatprep.subr.bf16.mxu0 %v5984_v1  ;;  %v6027_v17 = vld [vmem:[#allocation6 + $0x4d8] ss:$28 sps:$4 sm:$0xff]   ;;  %v6035_v1 = vld [vmem:[#allocation6 + $0x4a4] ss:$28 sps:$4 sm:$0xff]  }
 0x181   :  { %3653 = vmatpush2.bf16.msra.mxu1 %v5979_v19  ;;  %v6030_v19 = vld [vmem:[#allocation6 + $0x318] ss:$28 sps:$4 sm:$0xff]  }
 0x182   :  { %3723 = vmatpush1.bf16.msra.mxu0 %v5982_v20  ;;  %3654 = vmatprep.subr.bf16.mxu1 %v5987_v21  ;;  %v6033_v20 = vld [vmem:[#allocation6 + $0x4a0] ss:$28 sps:$4 sm:$0xff]  }
 0x183   :  { %3724 = vmatprep.subr.bf16.mxu0 %v5990_v22  ;;  %v6038_v21 = vld [vmem:[#allocation6 + $0x2e4] ss:$28 sps:$4 sm:$0xff]  }
 0x184   :  { %v6036_v22 = vld [vmem:[#allocation6 + $0x2e0] ss:$28 sps:$4 sm:$0xff]  }
 0x185   :  { %3655 = vmatpush2.bf16.msra.mxu1 %v5985_v23  ;;  %v6041_v23 = vld [vmem:[#allocation6 + $0x46c] ss:$28 sps:$4 sm:$0xff]  }
 0x186   :  { %3725 = vmatpush1.bf16.msra.mxu0 %v5988_v24  ;;  %3656 = vmatprep.subr.bf16.mxu1 %v5993_v26  ;;  %v6044_v24 = vld [vmem:[#allocation6 + $0x2ac] ss:$28 sps:$4 sm:$0xff]  }
 0x187   :  { %3726 = vmatprep.subr.bf16.mxu0 %v5996_v30  ;;  %v6039_v26 = vld [vmem:[#allocation6 + $0x468] ss:$28 sps:$4 sm:$0xff]  }
 0x188   :  { %v6042_v30 = vld [vmem:[#allocation6 + $0x2a8] ss:$28 sps:$4 sm:$0xff]  }
 0x189   :  { %3657 = vmatpush2.bf16.msra.mxu1 %v5991_v31  ;;  %v6047_v31 = vld [vmem:[#allocation6 + $0x434] ss:$28 sps:$4 sm:$0xff]  }
 0x18a   :  { %3727 = vmatpush1.bf16.msra.mxu0 %v5994_v32  ;;  %3658 = vmatprep.subr.bf16.mxu1 %v5999_v33  ;;  %v6050_v32 = vld [vmem:[#allocation6 + $0x274] ss:$28 sps:$4 sm:$0xff]  }
 0x18b   :  { %3728 = vmatprep.subr.bf16.mxu0 %v6002_v34  ;;  %v6045_v33 = vld [vmem:[#allocation6 + $0x430] ss:$28 sps:$4 sm:$0xff]  }
 0x18c   :  { %v6048_v34 = vld [vmem:[#allocation6 + $0x270] ss:$28 sps:$4 sm:$0xff]  }
 0x18d   :  { %3659 = vmatpush2.bf16.msra.mxu1 %v5997_v35  ;;  %v6053_v35 = vld [vmem:[#allocation6 + $0x3fc] ss:$28 sps:$4 sm:$0xff]  }
 0x18e   :  { %3729 = vmatpush1.bf16.msra.mxu0 %v6000_v36  ;;  %v976_v44 = vpop.f32.mrf.mxu0  ;;  %3660 = vmatprep.subr.bf16.mxu1 %v6005_v38  ;;  %v6056_v36 = vld [vmem:[#allocation6 + $0x23c] ss:$28 sps:$4 sm:$0xff]  }
 0x18f   :  { %3730 = vmatprep.subr.bf16.mxu0 %v6008_v41  ;;  %v977_v0 = vadd.f32 %v976_v44, %v254_v49  ;;  %v6051_v38 = vld [vmem:[#allocation6 + $0x3f8] ss:$28 sps:$4 sm:$0xff]   ;;  %v6057_v44 = vld [vmem:[#allocation6 + $0x3c0] ss:$28 sps:$4 sm:$0xff]  }
 0x190   :  { %v978_v50 = vpop.f32.mrf.mxu0  ;;  %v6054_v41 = vld [vmem:[#allocation6 + $0x238] ss:$28 sps:$4 sm:$0xff]  }
 0x191   :  { %3661 = vmatpush2.bf16.msra.mxu1 %v6003_v42  ;;  %v979_v61 = vadd.f32 %v978_v50, %v258_v48  ;;  %v1030_v10 = vmax.f32 %v977_v0, 0.0  ;;  %v6059_v42 = vld [vmem:[#allocation6 + $0x3c4] ss:$28 sps:$4 sm:$0xff]   ;;  %v6078_v0 = vld [vmem:[#allocation6 + $0x858] ss:$28 sps:$4 sm:$0xff]  }
 0x192   :  { %3731 = vmatpush1.bf16.msra.mxu0 %v6006_v43  ;;  %v980_v52 = vpop.f32.mrf.mxu0  ;;  %3662 = vmatprep.subr.bf16.mxu1 %v6011_v45  ;;  %v6062_v43 = vld [vmem:[#allocation6 + $0x204] ss:$28 sps:$4 sm:$0xff]  }
 0x193   :  { %v981_v62 = vadd.f32 %v980_v52, %v254_v49  ;;  %3732 = vmatprep.subr.bf16.mxu0 %v6014_v46  ;;  %v1031_v8 = vmax.f32 %v979_v61, 0.0  ;;  %v6060_v45 = vld [vmem:[#allocation6 + $0x200] ss:$28 sps:$4 sm:$0xff]   ;;  %v6065_v46 = vld [vmem:[#allocation6 + $0x38c] ss:$28 sps:$4 sm:$0xff]  }
 0x194   :  { %v982_v2 = vpop.f32.mrf.mxu0  ;;  %v6063_v49 = vld [vmem:[#allocation6 + $0x388] ss:$28 sps:$4 sm:$0xff]   ;;  %v6074_v52 = vld [vmem:[#allocation6 + $0x894] ss:$28 sps:$4 sm:$0xff]   ;;  %v6077_v61 = vld [vmem:[#allocation6 + $0x69c] ss:$28 sps:$4 sm:$0xff]  }
 0x195   :  { %v983_v4 = vadd.f32 %v982_v2, %v258_v48  ;;  %3663 = vmatpush2.bf16.msra.mxu1 %v6009_v51  ;;  %v1037_v56 = vmax.f32 %v981_v62, 0.0  ;;  %v6068_v48 = vld [vmem:[#allocation6 + $0x1cc] ss:$28 sps:$4 sm:$0xff]   ;;  %v6071_v51 = vld [vmem:[#allocation6 + $0x6d4] ss:$28 sps:$4 sm:$0xff]  }
 0x196   :  { %3733 = vmatpush1.bf16.msra.mxu0 %v6012_v59  ;;  %3664 = vmatprep.subr.bf16.mxu1 %v6017_v60  ;;  %v6066_v50 = vld [vmem:[#allocation6 + $0x1c8] ss:$28 sps:$4 sm:$0xff]   ;;  %v6069_v59 = vld [vmem:[#allocation6 + $0x6d0] ss:$28 sps:$4 sm:$0xff]   ;;  %v6080_v62 = vld [vmem:[#allocation6 + $0x85c] ss:$28 sps:$4 sm:$0xff]  }
 0x197   :  { %v1038_v9 = vmax.f32 %v983_v4, 0.0  ;;  %3734 = vmatprep.subr.bf16.mxu0 %v6020_v63  ;;  %v6707_v13 = vpack.c.bf16 %v1037_v56, %v1030_v10  ;;  %v6072_v60 = vld [vmem:[#allocation6 + $0x890] ss:$28 sps:$4 sm:$0xff]   ;;  %v6075_v63 = vld [vmem:[#allocation6 + $0x698] ss:$28 sps:$4 sm:$0xff]  }
 0x198   :  { %v6083_v2 = vld [vmem:[#allocation6 + $0x664] ss:$28 sps:$4 sm:$0xff]   ;;  %v6092_v56 = vld [vmem:[#allocation6 + $0x7ec] ss:$28 sps:$4 sm:$0xff]   ;;  %v6098_v10 = vld [vmem:[#allocation6 + $0x7b4] ss:$28 sps:$4 sm:$0xff]  }
 0x199   :  { %v6705_v11 = vpack.c.bf16 %v1038_v9, %v1031_v8  ;;  %3665 = vmatpush2.bf16.msra.mxu1 %v6015_v3  ;;  %v6086_v3 = vld [vmem:[#allocation6 + $0x824] ss:$28 sps:$4 sm:$0xff]   ;;  %v6095_v9 = vld [vmem:[#allocation6 + $0x5f4] ss:$28 sps:$4 sm:$0xff]  }
 0x19a   :  { %3735 = vmatpush1.bf16.msra.mxu0 %v6018_v5  ;;  %3763 = vmatprep.subr.bf16.mxu1 %v6023_v6  ;;  %v6081_v4 = vld [vmem:[#allocation6 + $0x660] ss:$28 sps:$4 sm:$0xff]   ;;  %v6089_v6 = vld [vmem:[#allocation6 + $0x62c] ss:$28 sps:$4 sm:$0xff]  }
 0x19b   :  { %3666 = vmatprep.mubr.bf16.mxu1 %v6705_v11  ;;  %3736 = vmatprep.subr.bf16.mxu0 %v6026_v7  ;;  %v6084_v5 = vld [vmem:[#allocation6 + $0x820] ss:$28 sps:$4 sm:$0xff]   ;;  %v6087_v7 = vld [vmem:[#allocation6 + $0x628] ss:$28 sps:$4 sm:$0xff]  }
 0x19c   :  { %3667 = vmatmul.mubr.bf16.vlgmr.msra.gmra.mxu1 %v6707_v13  ;;  %v6090_v8 = vld [vmem:[#allocation6 + $0x7e8] ss:$28 sps:$4 sm:$0xff]  }
 0x19d   :  { %3764 = vmatpush1.bf16.msra.mxu1 %v6021_v12  ;;  %3795 = vmatprep.mubr.bf16.mxu1 %v6680_v28  ;;  %v6093_v12 = vld [vmem:[#allocation6 + $0x5f0] ss:$28 sps:$4 sm:$0xff]  }
 0x19e   :  { %3737 = vmatpush2.bf16.msra.mxu0 %v6024_v14  ;;  %3765 = vmatprep.subr.bf16.mxu1 %v6029_v15  ;;  %v6096_v14 = vld [vmem:[#allocation6 + $0x7b0] ss:$28 sps:$4 sm:$0xff]   ;;  %v6101_v15 = vld [vmem:[#allocation6 + $0x5bc] ss:$28 sps:$4 sm:$0xff]  }
 0x19f   :  { %3738 = vmatprep.subr.bf16.mxu0 %v6032_v16  ;;  %v6104_v16 = vld [vmem:[#allocation6 + $0x77c] ss:$28 sps:$4 sm:$0xff]  }
 0x1a1   :  { %3766 = vmatpush1.bf16.msra.mxu1 %v6027_v17  ;;  %v6099_v17 = vld [vmem:[#allocation6 + $0x5b8] ss:$28 sps:$4 sm:$0xff]  }
 0x1a2   :  { %3739 = vmatpush2.bf16.msra.mxu0 %v6030_v19  ;;  %3767 = vmatprep.subr.bf16.mxu1 %v6035_v1  ;;  %v6102_v19 = vld [vmem:[#allocation6 + $0x778] ss:$28 sps:$4 sm:$0xff]   ;;  %v6107_v1 = vld [vmem:[#allocation6 + $0x584] ss:$28 sps:$4 sm:$0xff]  }
 0x1a3   :  { %3740 = vmatprep.subr.bf16.mxu0 %v6038_v21  ;;  %v6105_v21 = vld [vmem:[#allocation6 + $0x580] ss:$28 sps:$4 sm:$0xff]  }
 0x1a5   :  { %3768 = vmatpush1.bf16.msra.mxu1 %v6033_v20  ;;  %v6110_v20 = vld [vmem:[#allocation6 + $0x744] ss:$28 sps:$4 sm:$0xff]  }
 0x1a6   :  { %3741 = vmatpush2.bf16.msra.mxu0 %v6036_v22  ;;  %3769 = vmatprep.subr.bf16.mxu1 %v6041_v23  ;;  %v6108_v22 = vld [vmem:[#allocation6 + $0x740] ss:$28 sps:$4 sm:$0xff]   ;;  %v6113_v23 = vld [vmem:[#allocation6 + $0x54c] ss:$28 sps:$4 sm:$0xff]  }
 0x1a7   :  { %3742 = vmatprep.subr.bf16.mxu0 %v6044_v24  ;;  %v6116_v24 = vld [vmem:[#allocation6 + $0x70c] ss:$28 sps:$4 sm:$0xff]  }
 0x1a9   :  { %3770 = vmatpush1.bf16.msra.mxu1 %v6039_v26  ;;  %v6111_v26 = vld [vmem:[#allocation6 + $0x548] ss:$28 sps:$4 sm:$0xff]  }
 0x1aa   :  { %3743 = vmatpush2.bf16.msra.mxu0 %v6042_v30  ;;  %3771 = vmatprep.subr.bf16.mxu1 %v6047_v31  ;;  %v6114_v30 = vld [vmem:[#allocation6 + $0x708] ss:$28 sps:$4 sm:$0xff]   ;;  %v6119_v31 = vld [vmem:[#allocation6 + $0xc14] ss:$28 sps:$4 sm:$0xff]  }
 0x1ab   :  { %3744 = vmatprep.subr.bf16.mxu0 %v6050_v32  ;;  %v6122_v32 = vld [vmem:[#allocation6 + $0xa54] ss:$28 sps:$4 sm:$0xff]  }
 0x1ad   :  { %3772 = vmatpush1.bf16.msra.mxu1 %v6045_v33  ;;  %v6117_v33 = vld [vmem:[#allocation6 + $0xc10] ss:$28 sps:$4 sm:$0xff]  }
 0x1ae   :  { %3745 = vmatpush2.bf16.msra.mxu0 %v6048_v34  ;;  %3773 = vmatprep.subr.bf16.mxu1 %v6053_v35  ;;  %v6120_v34 = vld [vmem:[#allocation6 + $0xa50] ss:$28 sps:$4 sm:$0xff]   ;;  %v6125_v35 = vld [vmem:[#allocation6 + $0xbdc] ss:$28 sps:$4 sm:$0xff]  }
 0x1af   :  { %3746 = vmatprep.subr.bf16.mxu0 %v6056_v36  ;;  %v6128_v36 = vld [vmem:[#allocation6 + $0xa1c] ss:$28 sps:$4 sm:$0xff]  }
 0x1b1   :  { %3774 = vmatpush1.bf16.msra.mxu1 %v6051_v38  ;;  %v6123_v38 = vld [vmem:[#allocation6 + $0xbd8] ss:$28 sps:$4 sm:$0xff]  }
 0x1b2   :  { %3747 = vmatpush2.bf16.msra.mxu0 %v6054_v41  ;;  %3775 = vmatprep.subr.bf16.mxu1 %v6059_v42  ;;  %v6126_v41 = vld [vmem:[#allocation6 + $0xa18] ss:$28 sps:$4 sm:$0xff]   ;;  %v6131_v42 = vld [vmem:[#allocation6 + $0xba4] ss:$28 sps:$4 sm:$0xff]  }
 0x1b3   :  { %3748 = vmatprep.subr.bf16.mxu0 %v6062_v43  ;;  %v6134_v43 = vld [vmem:[#allocation6 + $0x9e4] ss:$28 sps:$4 sm:$0xff]  }
 0x1b5   :  { %3776 = vmatpush1.bf16.msra.mxu1 %v6057_v44  ;;  %v6129_v44 = vld [vmem:[#allocation6 + $0xba0] ss:$28 sps:$4 sm:$0xff]  }
 0x1b6   :  { %3749 = vmatpush2.bf16.msra.mxu0 %v6060_v45  ;;  %3777 = vmatprep.subr.bf16.mxu1 %v6065_v46  ;;  %v6132_v45 = vld [vmem:[#allocation6 + $0x9e0] ss:$28 sps:$4 sm:$0xff]   ;;  %v6137_v46 = vld [vmem:[#allocation6 + $0xb6c] ss:$28 sps:$4 sm:$0xff]  }
 0x1b7   :  { %3750 = vmatprep.subr.bf16.mxu0 %v6068_v48  ;;  %v6140_v48 = vld [vmem:[#allocation6 + $0x9ac] ss:$28 sps:$4 sm:$0xff]  }
 0x1b9   :  { %3778 = vmatpush1.bf16.msra.mxu1 %v6063_v49  ;;  %v6135_v49 = vld [vmem:[#allocation6 + $0xb68] ss:$28 sps:$4 sm:$0xff]  }
 0x1ba   :  { %3751 = vmatpush2.bf16.msra.mxu0 %v6066_v50  ;;  %3779 = vmatprep.subr.bf16.mxu1 %v6071_v51  ;;  %v6138_v50 = vld [vmem:[#allocation6 + $0x9a8] ss:$28 sps:$4 sm:$0xff]   ;;  %v6143_v51 = vld [vmem:[#allocation6 + $0xb34] ss:$28 sps:$4 sm:$0xff]  }
 0x1bb   :  { %3806 = vmatprep.subr.bf16.mxu0 %v6074_v52  ;;  %v6146_v52 = vld [vmem:[#allocation6 + $0x974] ss:$28 sps:$4 sm:$0xff]  }
 0x1bd   :  { %3753 = vmatmul.mubr.bf16.vlgmr.msra.gmra.mxu0 %v6682_v29  ;;  %3780 = vmatpush2.bf16.msra.mxu1 %v6069_v59  ;;  %v6141_v59 = vld [vmem:[#allocation6 + $0xb30] ss:$28 sps:$4 sm:$0xff]  }
 0x1be   :  { %3807 = vmatpush1.bf16.msra.mxu0 %v6072_v60  ;;  %3838 = vmatprep.mubr.bf16.mxu0 %v6705_v11  ;;  %v6144_v60 = vld [vmem:[#allocation6 + $0x970] ss:$28 sps:$4 sm:$0xff]  }
 0x1bf   :  { %3781 = vmatprep.subr.bf16.mxu1 %v6077_v61  ;;  %3808 = vmatprep.subr.bf16.mxu0 %v6080_v62  ;;  %v6149_v61 = vld [vmem:[#allocation6 + $0xafc] ss:$28 sps:$4 sm:$0xff]  }
 0x1c0   :  { %v6152_v62 = vld [vmem:[#allocation6 + $0x93c] ss:$28 sps:$4 sm:$0xff]  }
 0x1c1   :  { %3782 = vmatpush2.bf16.msra.mxu1 %v6075_v63  ;;  %v6147_v63 = vld [vmem:[#allocation6 + $0xaf8] ss:$28 sps:$4 sm:$0xff]  }
 0x1c2   :  { %3809 = vmatpush1.bf16.msra.mxu0 %v6078_v0  ;;  %3783 = vmatprep.subr.bf16.mxu1 %v6083_v2  ;;  %v6150_v0 = vld [vmem:[#allocation6 + $0x938] ss:$28 sps:$4 sm:$0xff]   ;;  %v6155_v2 = vld [vmem:[#allocation6 + $0xac4] ss:$28 sps:$4 sm:$0xff]  }
 0x1c3   :  { %3810 = vmatprep.subr.bf16.mxu0 %v6086_v3  ;;  %v6158_v3 = vld [vmem:[#allocation6 + $0x904] ss:$28 sps:$4 sm:$0xff]  }
 0x1c5   :  { %3784 = vmatpush2.bf16.msra.mxu1 %v6081_v4  ;;  %v6153_v4 = vld [vmem:[#allocation6 + $0xac0] ss:$28 sps:$4 sm:$0xff]  }
 0x1c6   :  { %3811 = vmatpush1.bf16.msra.mxu0 %v6084_v5  ;;  %3785 = vmatprep.subr.bf16.mxu1 %v6089_v6  ;;  %v6156_v5 = vld [vmem:[#allocation6 + $0x900] ss:$28 sps:$4 sm:$0xff]   ;;  %v6161_v6 = vld [vmem:[#allocation6 + $0xa8c] ss:$28 sps:$4 sm:$0xff]  }
 0x1c7   :  { %3812 = vmatprep.subr.bf16.mxu0 %v6092_v56  ;;  %v6164_v56 = vld [vmem:[#allocation6 + $0x8cc] ss:$28 sps:$4 sm:$0xff]  }
 0x1c9   :  { %3786 = vmatpush2.bf16.msra.mxu1 %v6087_v7  ;;  %v6159_v7 = vld [vmem:[#allocation6 + $0xa88] ss:$28 sps:$4 sm:$0xff]  }
 0x1ca   :  { %3813 = vmatpush1.bf16.msra.mxu0 %v6090_v8  ;;  %3787 = vmatprep.subr.bf16.mxu1 %v6095_v9  ;;  %v6162_v8 = vld [vmem:[#allocation6 + $0x8c8] ss:$28 sps:$4 sm:$0xff]   ;;  %v6167_v9 = vld [vmem:[#allocation6 + $0x19c] ss:$28 sps:$4 sm:$0xff]  }
 0x1cb   :  { %3814 = vmatprep.subr.bf16.mxu0 %v6098_v10  ;;  %v6170_v10 = vld [vmem:[#allocation6 + $0x51c] ss:$28 sps:$4 sm:$0xff]  }
 0x1cd   :  { %3788 = vmatpush2.bf16.msra.mxu1 %v6093_v12  ;;  %v6165_v12 = vld [vmem:[#allocation6 + $0x198] ss:$28 sps:$4 sm:$0xff]  }
 0x1ce   :  { %3815 = vmatpush1.bf16.msra.mxu0 %v6096_v14  ;;  %3789 = vmatprep.subr.bf16.mxu1 %v6101_v15  ;;  %v6168_v14 = vld [vmem:[#allocation6 + $0x518] ss:$28 sps:$4 sm:$0xff]   ;;  %v6173_v15 = vld [vmem:[#allocation6 + $0x164] ss:$28 sps:$4 sm:$0xff]  }
 0x1cf   :  { %3816 = vmatprep.subr.bf16.mxu0 %v6104_v16  ;;  %v6176_v16 = vld [vmem:[#allocation6 + $0x4e4] ss:$28 sps:$4 sm:$0xff]  }
 0x1d1   :  { %3790 = vmatpush2.bf16.msra.mxu1 %v6099_v17  ;;  %v6171_v17 = vld [vmem:[#allocation6 + $0x160] ss:$28 sps:$4 sm:$0xff]  }
 0x1d2   :  { %3817 = vmatpush1.bf16.msra.mxu0 %v6102_v19  ;;  %3791 = vmatprep.subr.bf16.mxu1 %v6107_v1  ;;  %v6174_v19 = vld [vmem:[#allocation6 + $0x4e0] ss:$28 sps:$4 sm:$0xff]   ;;  %v6179_v1 = vld [vmem:[#allocation6 + $0x12c] ss:$28 sps:$4 sm:$0xff]  }
 0x1d3   :  { %3818 = vmatprep.subr.bf16.mxu0 %v6110_v20  ;;  %v6182_v20 = vld [vmem:[#allocation6 + $0x4ac] ss:$28 sps:$4 sm:$0xff]  }
 0x1d5   :  { %3792 = vmatpush2.bf16.msra.mxu1 %v6105_v21  ;;  %v6177_v21 = vld [vmem:[#allocation6 + $0x128] ss:$28 sps:$4 sm:$0xff]  }
 0x1d6   :  { %3819 = vmatpush1.bf16.msra.mxu0 %v6108_v22  ;;  %3793 = vmatprep.subr.bf16.mxu1 %v6113_v23  ;;  %v6180_v22 = vld [vmem:[#allocation6 + $0x4a8] ss:$28 sps:$4 sm:$0xff]   ;;  %v6185_v23 = vld [vmem:[#allocation6 + $0xf4] ss:$28 sps:$4 sm:$0xff]  }
 0x1d7   :  { %3820 = vmatprep.subr.bf16.mxu0 %v6116_v24  ;;  %v6188_v24 = vld [vmem:[#allocation6 + $0x474] ss:$28 sps:$4 sm:$0xff]  }
 0x1d9   :  { %3794 = vmatpush2.bf16.msra.mxu1 %v6111_v26  ;;  %v6183_v26 = vld [vmem:[#allocation6 + $0xf0] ss:$28 sps:$4 sm:$0xff]  }
 0x1da   :  { %3821 = vmatpush1.bf16.msra.mxu0 %v6114_v30  ;;  %3849 = vmatprep.subr.bf16.mxu1 %v6119_v31  ;;  %v6186_v30 = vld [vmem:[#allocation6 + $0x470] ss:$28 sps:$4 sm:$0xff]   ;;  %v6191_v31 = vld [vmem:[#allocation6 + $0xbc] ss:$28 sps:$4 sm:$0xff]  }
 0x1db   :  { %3822 = vmatprep.subr.bf16.mxu0 %v6122_v32  ;;  %v6194_v32 = vld [vmem:[#allocation6 + $0x43c] ss:$28 sps:$4 sm:$0xff]  }
 0x1dc   :  { %3796 = vmatmul.mubr.bf16.vlgmr.msra.gmra.mxu1 %v6676_v25 }
 0x1dd   :  { %3850 = vmatpush1.bf16.msra.mxu1 %v6117_v33  ;;  %3881 = vmatprep.mubr.bf16.mxu1 %v6583_v37  ;;  %v6189_v33 = vld [vmem:[#allocation6 + $0xb8] ss:$28 sps:$4 sm:$0xff]  }
 0x1de   :  { %3823 = vmatpush2.bf16.msra.mxu0 %v6120_v34  ;;  %3851 = vmatprep.subr.bf16.mxu1 %v6125_v35  ;;  %v6192_v34 = vld [vmem:[#allocation6 + $0x438] ss:$28 sps:$4 sm:$0xff]   ;;  %v6197_v35 = vld [vmem:[#allocation6 + $0x84] ss:$28 sps:$4 sm:$0xff]  }
 0x1df   :  { %3824 = vmatprep.subr.bf16.mxu0 %v6128_v36  ;;  %v6200_v36 = vld [vmem:[#allocation6 + $0x404] ss:$28 sps:$4 sm:$0xff]  }
 0x1e1   :  { %3852 = vmatpush1.bf16.msra.mxu1 %v6123_v38  ;;  %v6195_v38 = vld [vmem:[#allocation6 + $0x80] ss:$28 sps:$4 sm:$0xff]  }
 0x1e2   :  { %3825 = vmatpush2.bf16.msra.mxu0 %v6126_v41  ;;  %3853 = vmatprep.subr.bf16.mxu1 %v6131_v42  ;;  %v6198_v41 = vld [vmem:[#allocation6 + $0x400] ss:$28 sps:$4 sm:$0xff]   ;;  %v6203_v42 = vld [vmem:[#allocation6 + $0x4c] ss:$28 sps:$4 sm:$0xff]  }
 0x1e3   :  { %3826 = vmatprep.subr.bf16.mxu0 %v6134_v43  ;;  %v6206_v43 = vld [vmem:[#allocation6 + $0x3cc] ss:$28 sps:$4 sm:$0xff]  }
 0x1e5   :  { %3854 = vmatpush1.bf16.msra.mxu1 %v6129_v44  ;;  %v6201_v44 = vld [vmem:[#allocation6 + $0x48] ss:$28 sps:$4 sm:$0xff]  }
 0x1e6   :  { %3827 = vmatpush2.bf16.msra.mxu0 %v6132_v45  ;;  %3855 = vmatprep.subr.bf16.mxu1 %v6137_v46  ;;  %v6204_v45 = vld [vmem:[#allocation6 + $0x3c8] ss:$28 sps:$4 sm:$0xff]   ;;  %v6209_v46 = vld [vmem:[#allocation6 + $0x14] ss:$28 sps:$4 sm:$0xff]  }
 0x1e7   :  { %3828 = vmatprep.subr.bf16.mxu0 %v6140_v48  ;;  %v6212_v48 = vld [vmem:[#allocation6 + $0x394] ss:$28 sps:$4 sm:$0xff]  }
 0x1e9   :  { %3856 = vmatpush1.bf16.msra.mxu1 %v6135_v49  ;;  %v6207_v49 = vld [vmem:[#allocation6 + $0x10] ss:$28 sps:$4 sm:$0xff]  }
 0x1ea   :  { %3829 = vmatpush2.bf16.msra.mxu0 %v6138_v50  ;;  %3857 = vmatprep.subr.bf16.mxu1 %v6143_v51  ;;  %v6210_v50 = vld [vmem:[#allocation6 + $0x390] ss:$28 sps:$4 sm:$0xff]   ;;  %v6215_v51 = vld [vmem:[#allocation6 + $0x35c] ss:$28 sps:$4 sm:$0xff]  }
 0x1eb   :  { %3830 = vmatprep.subr.bf16.mxu0 %v6146_v52  ;;  %v6218_v52 = vld [vmem:[#allocation6 + $0x6dc] ss:$28 sps:$4 sm:$0xff]  }
 0x1ed   :  { %3858 = vmatpush1.bf16.msra.mxu1 %v6141_v59  ;;  %v6213_v59 = vld [vmem:[#allocation6 + $0x358] ss:$28 sps:$4 sm:$0xff]  }
 0x1ee   :  { %3831 = vmatpush2.bf16.msra.mxu0 %v6144_v60  ;;  %3859 = vmatprep.subr.bf16.mxu1 %v6149_v61  ;;  %v6216_v60 = vld [vmem:[#allocation6 + $0x6d8] ss:$28 sps:$4 sm:$0xff]   ;;  %v6221_v61 = vld [vmem:[#allocation6 + $0x324] ss:$28 sps:$4 sm:$0xff]  }
 0x1ef   :  { %3832 = vmatprep.subr.bf16.mxu0 %v6152_v62  ;;  %v6224_v62 = vld [vmem:[#allocation6 + $0x6a4] ss:$28 sps:$4 sm:$0xff]  }
 0x1f1   :  { %3860 = vmatpush1.bf16.msra.mxu1 %v6147_v63  ;;  %v6219_v63 = vld [vmem:[#allocation6 + $0x320] ss:$28 sps:$4 sm:$0xff]  }
 0x1f2   :  { %3833 = vmatpush2.bf16.msra.mxu0 %v6150_v0  ;;  %3861 = vmatprep.subr.bf16.mxu1 %v6155_v2  ;;  %v6222_v0 = vld [vmem:[#allocation6 + $0x6a0] ss:$28 sps:$4 sm:$0xff]   ;;  %v6227_v2 = vld [vmem:[#allocation6 + $0x2ec] ss:$28 sps:$4 sm:$0xff]  }
 0x1f3   :  { %3834 = vmatprep.subr.bf16.mxu0 %v6158_v3  ;;  %v6230_v3 = vld [vmem:[#allocation6 + $0x66c] ss:$28 sps:$4 sm:$0xff]  }
 0x1f5   :  { %3862 = vmatpush1.bf16.msra.mxu1 %v6153_v4  ;;  %v6225_v4 = vld [vmem:[#allocation6 + $0x2e8] ss:$28 sps:$4 sm:$0xff]  }
 0x1f6   :  { %3835 = vmatpush2.bf16.msra.mxu0 %v6156_v5  ;;  %3863 = vmatprep.subr.bf16.mxu1 %v6161_v6  ;;  %v6228_v5 = vld [vmem:[#allocation6 + $0x668] ss:$28 sps:$4 sm:$0xff]   ;;  %v6233_v6 = vld [vmem:[#allocation6 + $0x2b4] ss:$28 sps:$4 sm:$0xff]  }
 0x1f7   :  { %3836 = vmatprep.subr.bf16.mxu0 %v6164_v56  ;;  %v6236_v56 = vld [vmem:[#allocation6 + $0x634] ss:$28 sps:$4 sm:$0xff]  }
 0x1f9   :  { %3864 = vmatpush1.bf16.msra.mxu1 %v6159_v7  ;;  %v6231_v7 = vld [vmem:[#allocation6 + $0x2b0] ss:$28 sps:$4 sm:$0xff]  }
 0x1fa   :  { %3837 = vmatpush2.bf16.msra.mxu0 %v6162_v8  ;;  %3892 = vmatprep.subr.bf16.mxu1 %v6167_v9  ;;  %v6234_v8 = vld [vmem:[#allocation6 + $0x630] ss:$28 sps:$4 sm:$0xff]   ;;  %v6239_v9 = vld [vmem:[#allocation6 + $0x27c] ss:$28 sps:$4 sm:$0xff]  }
 0x1fb   :  { %3935 = vmatprep.subr.bf16.mxu0 %v6170_v10  ;;  %v6242_v10 = vld [vmem:[#allocation6 + $0x5fc] ss:$28 sps:$4 sm:$0xff]  }
 0x1fc   :  { %3882 = vmatmul.mubr.bf16.vlgmr.msra.gmra.mxu1 %v6693_v18 }
 0x1fd   :  { %3839 = vmatmul.mubr.bf16.vlgmr.msra.gmra.mxu0 %v6707_v13  ;;  %3893 = vmatpush1.bf16.msra.mxu1 %v6165_v12  ;;  %v6237_v12 = vld [vmem:[#allocation6 + $0x278] ss:$28 sps:$4 sm:$0xff]  }
 0x1fe   :  { %3924 = vmatprep.mubr.bf16.mxu1 %v6678_v27  ;;  %3936 = vmatpush1.bf16.msra.mxu0 %v6168_v14  ;;  %v6240_v14 = vld [vmem:[#allocation6 + $0x5f8] ss:$28 sps:$4 sm:$0xff]  }
 0x1ff   :  { %3967 = vmatprep.mubr.bf16.mxu0 %v6680_v28  ;;  %3894 = vmatprep.subr.bf16.mxu1 %v6173_v15  ;;  %v6245_v15 = vld [vmem:[#allocation6 + $0x244] ss:$28 sps:$4 sm:$0xff]  }
 0x200   :  { %3937 = vmatprep.subr.bf16.mxu0 %v6176_v16  ;;  %v6248_v16 = vld [vmem:[#allocation6 + $0x5c4] ss:$28 sps:$4 sm:$0xff]  }
 0x201   :  { %3895 = vmatpush1.bf16.msra.mxu1 %v6171_v17  ;;  %v6243_v17 = vld [vmem:[#allocation6 + $0x240] ss:$28 sps:$4 sm:$0xff]  }
 0x202   :  { %3938 = vmatpush1.bf16.msra.mxu0 %v6174_v19  ;;  %3896 = vmatprep.subr.bf16.mxu1 %v6179_v1  ;;  %v6246_v19 = vld [vmem:[#allocation6 + $0x5c0] ss:$28 sps:$4 sm:$0xff]   ;;  %v6251_v1 = vld [vmem:[#allocation6 + $0x20c] ss:$28 sps:$4 sm:$0xff]  }
 0x203   :  { %3939 = vmatprep.subr.bf16.mxu0 %v6182_v20  ;;  %v6254_v20 = vld [vmem:[#allocation6 + $0x58c] ss:$28 sps:$4 sm:$0xff]  }
 0x205   :  { %3897 = vmatpush1.bf16.msra.mxu1 %v6177_v21  ;;  %v6249_v21 = vld [vmem:[#allocation6 + $0x208] ss:$28 sps:$4 sm:$0xff]  }
 0x206   :  { %3940 = vmatpush1.bf16.msra.mxu0 %v6180_v22  ;;  %3898 = vmatprep.subr.bf16.mxu1 %v6185_v23  ;;  %v6252_v22 = vld [vmem:[#allocation6 + $0x588] ss:$28 sps:$4 sm:$0xff]   ;;  %v6257_v23 = vld [vmem:[#allocation6 + $0x1d4] ss:$28 sps:$4 sm:$0xff]  }
 0x207   :  { %3941 = vmatprep.subr.bf16.mxu0 %v6188_v24  ;;  %v6260_v24 = vld [vmem:[#allocation6 + $0x554] ss:$28 sps:$4 sm:$0xff]  }
 0x209   :  { %3899 = vmatpush1.bf16.msra.mxu1 %v6183_v26  ;;  %v6255_v26 = vld [vmem:[#allocation6 + $0x1d0] ss:$28 sps:$4 sm:$0xff]  }
 0x20a   :  { %3942 = vmatpush1.bf16.msra.mxu0 %v6186_v30  ;;  %3900 = vmatprep.subr.bf16.mxu1 %v6191_v31  ;;  %v6258_v30 = vld [vmem:[#allocation6 + $0x550] ss:$28 sps:$4 sm:$0xff]   ;;  %v6263_v31 = vld [vmem:[#allocation6 + $0x89c] ss:$28 sps:$4 sm:$0xff]  }
 0x20b   :  { %3943 = vmatprep.subr.bf16.mxu0 %v6194_v32  ;;  %v6266_v32 = vld [vmem:[#allocation6 + $0xc1c] ss:$28 sps:$4 sm:$0xff]  }
 0x20d   :  { %3901 = vmatpush1.bf16.msra.mxu1 %v6189_v33  ;;  %v6261_v33 = vld [vmem:[#allocation6 + $0x898] ss:$28 sps:$4 sm:$0xff]  }
 0x20e   :  { %3944 = vmatpush1.bf16.msra.mxu0 %v6192_v34  ;;  %3902 = vmatprep.subr.bf16.mxu1 %v6197_v35  ;;  %v6264_v34 = vld [vmem:[#allocation6 + $0xc18] ss:$28 sps:$4 sm:$0xff]   ;;  %v6269_v35 = vld [vmem:[#allocation6 + $0x864] ss:$28 sps:$4 sm:$0xff]  }
 0x20f   :  { %3945 = vmatprep.subr.bf16.mxu0 %v6200_v36  ;;  %v6272_v36 = vld [vmem:[#allocation6 + $0xbe4] ss:$28 sps:$4 sm:$0xff]  }
 0x211   :  { %3903 = vmatpush1.bf16.msra.mxu1 %v6195_v38  ;;  %v6267_v38 = vld [vmem:[#allocation6 + $0x860] ss:$28 sps:$4 sm:$0xff]  }
 0x212   :  { %3946 = vmatpush1.bf16.msra.mxu0 %v6198_v41  ;;  %3904 = vmatprep.subr.bf16.mxu1 %v6203_v42  ;;  %v6270_v41 = vld [vmem:[#allocation6 + $0xbe0] ss:$28 sps:$4 sm:$0xff]   ;;  %v6275_v42 = vld [vmem:[#allocation6 + $0x82c] ss:$28 sps:$4 sm:$0xff]  }
 0x213   :  { %3947 = vmatprep.subr.bf16.mxu0 %v6206_v43  ;;  %v6278_v43 = vld [vmem:[#allocation6 + $0xbac] ss:$28 sps:$4 sm:$0xff]  }
 0x215   :  { %3905 = vmatpush1.bf16.msra.mxu1 %v6201_v44  ;;  %v6273_v44 = vld [vmem:[#allocation6 + $0x828] ss:$28 sps:$4 sm:$0xff]  }
 0x216   :  { %3948 = vmatpush1.bf16.msra.mxu0 %v6204_v45  ;;  %3906 = vmatprep.subr.bf16.mxu1 %v6209_v46  ;;  %v6276_v45 = vld [vmem:[#allocation6 + $0xba8] ss:$28 sps:$4 sm:$0xff]   ;;  %v6281_v46 = vld [vmem:[#allocation6 + $0x7f4] ss:$28 sps:$4 sm:$0xff]  }
 0x217   :  { %3949 = vmatprep.subr.bf16.mxu0 %v6212_v48  ;;  %v6284_v48 = vld [vmem:[#allocation6 + $0xb74] ss:$28 sps:$4 sm:$0xff]  }
 0x219   :  { %3907 = vmatpush1.bf16.msra.mxu1 %v6207_v49  ;;  %v6279_v49 = vld [vmem:[#allocation6 + $0x7f0] ss:$28 sps:$4 sm:$0xff]  }
 0x21a   :  { %3950 = vmatpush1.bf16.msra.mxu0 %v6210_v50  ;;  %3908 = vmatprep.subr.bf16.mxu1 %v6215_v51  ;;  %v6282_v50 = vld [vmem:[#allocation6 + $0xb70] ss:$28 sps:$4 sm:$0xff]   ;;  %v6287_v51 = vld [vmem:[#allocation6 + $0x7bc] ss:$28 sps:$4 sm:$0xff]  }
 0x21b   :  { %3951 = vmatprep.subr.bf16.mxu0 %v6218_v52  ;;  %v6290_v52 = vld [vmem:[#allocation6 + $0xb3c] ss:$28 sps:$4 sm:$0xff]  }
 0x21d   :  { %3909 = vmatpush2.bf16.msra.mxu1 %v6213_v59  ;;  %v6285_v59 = vld [vmem:[#allocation6 + $0x7b8] ss:$28 sps:$4 sm:$0xff]  }
 0x21e   :  { %3952 = vmatpush2.bf16.msra.mxu0 %v6216_v60  ;;  %3910 = vmatprep.subr.bf16.mxu1 %v6221_v61  ;;  %v6293_v60 = vld [vmem:[#allocation6 + $0x784] ss:$28 sps:$4 sm:$0xff]  }
 0x21f   :  { %3953 = vmatprep.subr.bf16.mxu0 %v6224_v62  ;;  %v6296_v61 = vld [vmem:[#allocation6 + $0xb04] ss:$28 sps:$4 sm:$0xff]  }
 0x220   :  { %v6291_v62 = vld [vmem:[#allocation6 + $0x780] ss:$28 sps:$4 sm:$0xff]  }
 0x221   :  { %3911 = vmatpush2.bf16.msra.mxu1 %v6219_v63  ;;  %v6294_v63 = vld [vmem:[#allocation6 + $0xb00] ss:$28 sps:$4 sm:$0xff]  }
 0x222   :  { %3954 = vmatpush2.bf16.msra.mxu0 %v6222_v0  ;;  %3912 = vmatprep.subr.bf16.mxu1 %v6227_v2  ;;  %v6299_v0 = vld [vmem:[#allocation6 + $0x74c] ss:$28 sps:$4 sm:$0xff]  }
 0x223   :  { %3955 = vmatprep.subr.bf16.mxu0 %v6230_v3  ;;  %v6302_v2 = vld [vmem:[#allocation6 + $0xacc] ss:$28 sps:$4 sm:$0xff]  }
 0x224   :  { %v6297_v3 = vld [vmem:[#allocation6 + $0x748] ss:$28 sps:$4 sm:$0xff]  }
 0x225   :  { %3913 = vmatpush2.bf16.msra.mxu1 %v6225_v4  ;;  %v6300_v4 = vld [vmem:[#allocation6 + $0xac8] ss:$28 sps:$4 sm:$0xff]  }
 0x226   :  { %3956 = vmatpush2.bf16.msra.mxu0 %v6228_v5  ;;  %3914 = vmatprep.subr.bf16.mxu1 %v6233_v6  ;;  %v6305_v5 = vld [vmem:[#allocation6 + $0x714] ss:$28 sps:$4 sm:$0xff]  }
 0x227   :  { %3957 = vmatprep.subr.bf16.mxu0 %v6236_v56  ;;  %v6308_v6 = vld [vmem:[#allocation6 + $0xa94] ss:$28 sps:$4 sm:$0xff]  }
 0x228   :  { %v6303_v56 = vld [vmem:[#allocation6 + $0x710] ss:$28 sps:$4 sm:$0xff]  }
 0x229   :  { %3915 = vmatpush2.bf16.msra.mxu1 %v6231_v7  ;;  %v6306_v7 = vld [vmem:[#allocation6 + $0xa90] ss:$28 sps:$4 sm:$0xff]  }
 0x22a   :  { %3958 = vmatpush2.bf16.msra.mxu0 %v6234_v8  ;;  %3916 = vmatprep.subr.bf16.mxu1 %v6239_v9  ;;  %v6311_v8 = vld [vmem:[#allocation6 + $0xa5c] ss:$28 sps:$4 sm:$0xff]  }
 0x22b   :  { %3959 = vmatprep.subr.bf16.mxu0 %v6242_v10  ;;  %v6312_v9 = vld [vmem:[#allocation6 + $0x360] ss:$28 sps:$4 sm:$0xff]   ;;  %v6309_v10 = vld [vmem:[#allocation6 + $0xa58] ss:$28 sps:$4 sm:$0xff]  }
 0x22d   :  { %3917 = vmatpush2.bf16.msra.mxu1 %v6237_v12  ;;  %v6313_v12 = vld [vmem:[#allocation6 + $0x1a0] ss:$28 sps:$4 sm:$0xff]  }
 0x22e   :  { %3960 = vmatpush2.bf16.msra.mxu0 %v6240_v14  ;;  %3918 = vmatprep.subr.bf16.mxu1 %v6245_v15  ;;  %v6316_v14 = vld [vmem:[#allocation6 + $0xa24] ss:$28 sps:$4 sm:$0xff]  }
 0x22f   :  { %3961 = vmatprep.subr.bf16.mxu0 %v6248_v16  ;;  %v6317_v15 = vld [vmem:[#allocation6 + $0x328] ss:$28 sps:$4 sm:$0xff]   ;;  %v6314_v16 = vld [vmem:[#allocation6 + $0xa20] ss:$28 sps:$4 sm:$0xff]  }
 0x231   :  { %3919 = vmatpush2.bf16.msra.mxu1 %v6243_v17  ;;  %v6318_v17 = vld [vmem:[#allocation6 + $0x168] ss:$28 sps:$4 sm:$0xff]  }
 0x232   :  { %3962 = vmatpush2.bf16.msra.mxu0 %v6246_v19  ;;  %3920 = vmatprep.subr.bf16.mxu1 %v6251_v1  ;;  %v6321_v19 = vld [vmem:[#allocation6 + $0x9ec] ss:$28 sps:$4 sm:$0xff]  }
 0x233   :  { %3963 = vmatprep.subr.bf16.mxu0 %v6254_v20  ;;  %v6322_v1 = vld [vmem:[#allocation6 + $0x2f0] ss:$28 sps:$4 sm:$0xff]   ;;  %v6319_v20 = vld [vmem:[#allocation6 + $0x9e8] ss:$28 sps:$4 sm:$0xff]  }
 0x235   :  { %3921 = vmatpush2.bf16.msra.mxu1 %v6249_v21  ;;  %v6323_v21 = vld [vmem:[#allocation6 + $0x130] ss:$28 sps:$4 sm:$0xff]  }
 0x236   :  { %3964 = vmatpush2.bf16.msra.mxu0 %v6252_v22  ;;  %3922 = vmatprep.subr.bf16.mxu1 %v6257_v23  ;;  %v6326_v22 = vld [vmem:[#allocation6 + $0x9b4] ss:$28 sps:$4 sm:$0xff]  }
 0x237   :  { %3965 = vmatprep.subr.bf16.mxu0 %v6260_v24  ;;  %v6327_v23 = vld [vmem:[#allocation6 + $0x2b8] ss:$28 sps:$4 sm:$0xff]   ;;  %v6324_v24 = vld [vmem:[#allocation6 + $0x9b0] ss:$28 sps:$4 sm:$0xff]  }
 0x239   :  { %3923 = vmatpush2.bf16.msra.mxu1 %v6255_v26  ;;  %v6328_v26 = vld [vmem:[#allocation6 + $0xf8] ss:$28 sps:$4 sm:$0xff]  }
 0x23a   :  { %3966 = vmatpush2.bf16.msra.mxu0 %v6258_v30  ;;  %3978 = vmatprep.subr.bf16.mxu1 %v6263_v31  ;;  %v6331_v30 = vld [vmem:[#allocation6 + $0x97c] ss:$28 sps:$4 sm:$0xff]  }
 0x23b   :  { %4021 = vmatprep.subr.bf16.mxu0 %v6266_v32  ;;  %v6329_v31 = vld [vmem:[#allocation6 + $0x978] ss:$28 sps:$4 sm:$0xff]   ;;  %v6333_v32 = vld [vmem:[#allocation6 + $0xc0] ss:$28 sps:$4 sm:$0xff]  }
 0x23c   :  { %3925 = vmatmul.mubr.bf16.vlgmr.msra.gmra.mxu1 %v6682_v29 }
 0x23d   :  { %3968 = vmatmul.mubr.bf16.vlgmr.msra.gmra.mxu0 %v6676_v25  ;;  %3979 = vmatpush1.bf16.msra.mxu1 %v6261_v33  ;;  %v6336_v33 = vld [vmem:[#allocation6 + $0x944] ss:$28 sps:$4 sm:$0xff]  }
 0x23e   :  { %4010 = vmatprep.mubr.bf16.mxu1 %v6705_v11  ;;  %4022 = vmatpush1.bf16.msra.mxu0 %v6264_v34  ;;  %v6337_v34 = vld [vmem:[#allocation6 + $0x248] ss:$28 sps:$4 sm:$0xff]  }
 0x23f   :  { %3980 = vmatprep.subr.bf16.mxu1 %v6269_v35  ;;  %4023 = vmatprep.subr.bf16.mxu0 %v6272_v36  ;;  %v6334_v35 = vld [vmem:[#allocation6 + $0x940] ss:$28 sps:$4 sm:$0xff]   ;;  %v6338_v36 = vld [vmem:[#allocation6 + $0x88] ss:$28 sps:$4 sm:$0xff]  }
 0x240   :  { %4053 = vmatprep.mubr.bf16.mxu0 %v6583_v37  ;;  %v6288_v37 = vld [vmem:[#allocation6 + $0xb38] ss:$28 sps:$4 sm:$0xff]  }
 0x241   :  { %3981 = vmatpush1.bf16.msra.mxu1 %v6267_v38  ;;  %v6341_v38 = vld [vmem:[#allocation6 + $0x90c] ss:$28 sps:$4 sm:$0xff]  }
 0x242   :  { %4024 = vmatpush1.bf16.msra.mxu0 %v6270_v41  ;;  %3982 = vmatprep.subr.bf16.mxu1 %v6275_v42  ;;  %v6342_v41 = vld [vmem:[#allocation6 + $0x210] ss:$28 sps:$4 sm:$0xff]   ;;  %v6339_v42 = vld [vmem:[#allocation6 + $0x908] ss:$28 sps:$4 sm:$0xff]  }
 0x243   :  { %4025 = vmatprep.subr.bf16.mxu0 %v6278_v43  ;;  %v6343_v43 = vld [vmem:[#allocation6 + $0x50] ss:$28 sps:$4 sm:$0xff]  }
 0x245   :  { %3983 = vmatpush1.bf16.msra.mxu1 %v6273_v44  ;;  %v6346_v44 = vld [vmem:[#allocation6 + $0x8d4] ss:$28 sps:$4 sm:$0xff]  }
 0x246   :  { %4026 = vmatpush1.bf16.msra.mxu0 %v6276_v45  ;;  %3984 = vmatprep.subr.bf16.mxu1 %v6281_v46  ;;  %v6726_v45 = vpop.f32.mrf.mxu1  ;;  %v6347_v46 = vld [vmem:[#allocation6 + $0x1d8] ss:$28 sps:$4 sm:$0xff]  }
 0x247   :  { %4027 = vmatprep.subr.bf16.mxu0 %v6284_v48  ;;  %v6344_v48 = vld [vmem:[#allocation6 + $0x8d0] ss:$28 sps:$4 sm:$0xff]  }
 0x249   :  { %3985 = vmatpush1.bf16.msra.mxu1 %v6279_v49  ;;  %v6348_v49 = vld [vmem:[#allocation6 + $0x18] ss:$28 sps:$4 sm:$0xff]  }
 0x24a   :  { %4028 = vmatpush1.bf16.msra.mxu0 %v6282_v50  ;;  %3986 = vmatprep.subr.bf16.mxu1 %v6287_v51  ;;  %v6349_v50 = vld [vmem:[#allocation6 + $0x6e0] ss:$28 sps:$4 sm:$0xff]   ;;  %v3584_v51 = vpop.f32.mrf.mxu1 }
 0x24b   :  { %4029 = vmatprep.subr.bf16.mxu0 %v6290_v52  ;;  %v6351_v52 = vld [vmem:[#allocation6 + $0xa60] ss:$28 sps:$4 sm:$0xff]  }
 0x24d   :  { %3987 = vmatpush1.bf16.msra.mxu1 %v6285_v59  ;;  %v6728_v59 = vpop.f32.mrf.mxu0 }
 0x24e   :  { %4030 = vmatpush1.bf16.msra.mxu0 %v6288_v37  ;;  %3988 = vmatprep.subr.bf16.mxu1 %v6293_v60  ;;  %v6350_v37 = vld [vmem:[#allocation6 + $0x520] ss:$28 sps:$4 sm:$0xff]  }
 0x24f   :  { %4031 = vmatprep.subr.bf16.mxu0 %v6296_v61  ;;  %v6352_v60 = vld [vmem:[#allocation6 + $0x8a0] ss:$28 sps:$4 sm:$0xff]   ;;  %v6730_v61 = vpop.f32.mrf.mxu1 }
 0x251   :  { %3989 = vmatpush1.bf16.msra.mxu1 %v6291_v62  ;;  %v6353_v62 = vld [vmem:[#allocation6 + $0x6a8] ss:$28 sps:$4 sm:$0xff]  }
 0x252   :  { %4032 = vmatpush1.bf16.msra.mxu0 %v6294_v63  ;;  %3990 = vmatprep.subr.bf16.mxu1 %v6299_v0  ;;  %v6355_v63 = vld [vmem:[#allocation6 + $0xa28] ss:$28 sps:$4 sm:$0xff]   ;;  %v3627_v0 = vpop.f32.mrf.mxu0 }
 0x253   :  { %4033 = vmatprep.subr.bf16.mxu0 %v6302_v2  ;;  %v6354_v2 = vld [vmem:[#allocation6 + $0x4e8] ss:$28 sps:$4 sm:$0xff]  }
 0x255   :  { %3991 = vmatpush1.bf16.msra.mxu1 %v6297_v3  ;;  %v6356_v3 = vld [vmem:[#allocation6 + $0x868] ss:$28 sps:$4 sm:$0xff]  }
 0x256   :  { %4034 = vmatpush1.bf16.msra.mxu0 %v6300_v4  ;;  %3992 = vmatprep.subr.bf16.mxu1 %v6305_v5  ;;  %v6357_v4 = vld [vmem:[#allocation6 + $0x670] ss:$28 sps:$4 sm:$0xff]   ;;  %v3588_v5 = vpop.f32.mrf.mxu1 }
 0x257   :  { %4035 = vmatprep.subr.bf16.mxu0 %v6308_v6  ;;  %v6359_v6 = vld [vmem:[#allocation6 + $0x9f0] ss:$28 sps:$4 sm:$0xff]  }
 0x259   :  { %3993 = vmatpush1.bf16.msra.mxu1 %v6303_v56  ;;  %v6736_v56 = vpop.f32.mrf.mxu0 }
 0x25a   :  { %4036 = vmatpush1.bf16.msra.mxu0 %v6306_v7  ;;  %3994 = vmatprep.subr.bf16.mxu1 %v6311_v8  ;;  %v6358_v8 = vld [vmem:[#allocation6 + $0x4b0] ss:$28 sps:$4 sm:$0xff]  }
 0x25b   :  { %5463 = vmatprep.subr.bf16.mxu0 %v6312_v9  ;;  %v6361_v9 = vld [vmem:[#allocation6 + $0x638] ss:$28 sps:$4 sm:$0xff]  }
 0x25c   :  { %v6738_v7 = vpop.f32.mrf.mxu1 }
 0x25d   :  { %3995 = vmatpush2.bf16.msra.mxu1 %v6309_v10  ;;  %4054 = vmatmul.mubr.bf16.vlgmr.msra.gmra.mxu0 %v6693_v18  ;;  %v3631_v10 = vpop.f32.mrf.mxu0 }
 0x25e   :  { %5464 = vmatpush3.bf16.msra.mxu0 %v6313_v12  ;;  %4096 = vmatprep.mubr.bf16.mxu0 %v6678_v27  ;;  %v6332_v27 = vld [vmem:[#allocation6 + $0x280] ss:$28 sps:$4 sm:$0xff]   ;;  %v3670_v12 = vpop.f32.mrf.mxu1 }
 0x25f   :  { %3996 = vmatprep.subr.bf16.mxu1 %v6316_v14  ;;  %5465 = vmatprep.subr.bf16.mxu0 %v6317_v15  ;;  %v6362_v14 = vld [vmem:[#allocation6 + $0x478] ss:$28 sps:$4 sm:$0xff]   ;;  %v6365_v15 = vld [vmem:[#allocation6 + $0x600] ss:$28 sps:$4 sm:$0xff]  }
 0x261   :  { %3997 = vmatpush2.bf16.msra.mxu1 %v6314_v16  ;;  %v6740_v16 = vld [vmem:[#allocation7] sm:$0xff] }
 0x262   :  { %5466 = vmatpush3.bf16.msra.mxu0 %v6318_v17  ;;  %3998 = vmatprep.subr.bf16.mxu1 %v6321_v19  ;;  %v6742_v17 = vpop.f32.mrf.mxu0  ;;  %v6367_v19 = vld [vmem:[#allocation6 + $0x980] ss:$28 sps:$4 sm:$0xff]  }
 0x263   :  { %5467 = vmatprep.subr.bf16.mxu0 %v6322_v1  ;;  %v1504_v1 = vrot.slane %v6740_v16, %v241_v57  ;;  %v6372_v57 = vld [vmem:[#allocation6 + $0x788] ss:$28 sps:$4 sm:$0xff]  }
 0x265   :  { %3999 = vmatpush2.bf16.msra.mxu1 %v6319_v20  ;;  %v6747_v20 = vpop.f32.mrf.mxu1 }
 0x266   :  { %5468 = vmatpush3.bf16.msra.mxu0 %v6323_v21  ;;  %4000 = vmatprep.subr.bf16.mxu1 %v6326_v22  ;;  %v6366_v21 = vld [vmem:[#allocation6 + $0x440] ss:$28 sps:$4 sm:$0xff]   ;;  %v3589_v22 = vadd.f32 %v3588_v5, %v1504_v1 }
 0x267   :  { %5469 = vmatprep.subr.bf16.mxu0 %v6327_v23  ;;  %v6368_v23 = vld [vmem:[#allocation6 + $0x7c0] ss:$28 sps:$4 sm:$0xff]  }
 0x269   :  { %4001 = vmatpush2.bf16.msra.mxu1 %v6324_v24  ;;  %v6369_v24 = vld [vmem:[#allocation6 + $0x5c8] ss:$28 sps:$4 sm:$0xff]  }
 0x26a   :  { %5470 = vmatpush3.bf16.msra.mxu0 %v6328_v26  ;;  %4002 = vmatprep.subr.bf16.mxu1 %v6331_v30  ;;  %v3713_v26 = vpop.f32.mrf.mxu0  ;;  %v6371_v30 = vld [vmem:[#allocation6 + $0x948] ss:$28 sps:$4 sm:$0xff]  }
 0x26b   :  { %5471 = vmatprep.subr.bf16.mxu0 %v6332_v27  ;;  %v3585_v27 = vadd.f32 %v3584_v51, %v1504_v1  ;;  %v6378_v51 = vld [vmem:[#allocation6 + $0x398] ss:$28 sps:$4 sm:$0xff]  }
 0x26d   :  { %4003 = vmatpush2.bf16.msra.mxu1 %v6329_v31  ;;  %v3674_v31 = vpop.f32.mrf.mxu1 }
 0x26e   :  { %5472 = vmatpush3.bf16.msra.mxu0 %v6333_v32  ;;  %4004 = vmatprep.subr.bf16.mxu1 %v6336_v33  ;;  %v6370_v32 = vld [vmem:[#allocation6 + $0x408] ss:$28 sps:$4 sm:$0xff]   ;;  %v3632_v33 = vadd.f32 %v3631_v10, %v3589_v22 }
 0x26f   :  { %5473 = vmatprep.subr.bf16.mxu0 %v6337_v34  ;;  %v6373_v34 = vld [vmem:[#allocation6 + $0x590] ss:$28 sps:$4 sm:$0xff]  }
 0x270   :  { %v6392_v10 = vld [vmem:[#allocation9 + $0x20] sm:$0xff]  }
 0x271   :  { %4005 = vmatpush2.bf16.msra.mxu1 %v6334_v35  ;;  %v6749_v35 = vpop.f32.mrf.mxu0 }
 0x272   :  { %5474 = vmatpush3.bf16.msra.mxu0 %v6338_v36  ;;  %4006 = vmatprep.subr.bf16.mxu1 %v6341_v38  ;;  %v6375_v36 = vld [vmem:[#allocation6 + $0x910] ss:$28 sps:$4 sm:$0xff]   ;;  %v3628_v38 = vadd.f32 %v3627_v0, %v3585_v27 }
 0x273   :  { %5475 = vmatprep.subr.bf16.mxu0 %v6342_v41  ;;  %v3675_v41 = vadd.f32 %v3674_v31, %v3632_v33 }
 0x275   :  { %4007 = vmatpush2.bf16.msra.mxu1 %v6339_v42  ;;  %v6374_v42 = vld [vmem:[#allocation6 + $0x3d0] ss:$28 sps:$4 sm:$0xff]  }
 0x276   :  { %5476 = vmatpush3.bf16.msra.mxu0 %v6343_v43  ;;  %4008 = vmatprep.subr.bf16.mxu1 %v6346_v44  ;;  %v3671_v43 = vadd.f32 %v3670_v12, %v3628_v38  ;;  %v6376_v44 = vld [vmem:[#allocation6 + $0x750] ss:$28 sps:$4 sm:$0xff]   ;;  %v1500_v12 = vrot.slane %v6740_v16, %v237_v58  ;;  %v6398_v58 = vld [vmem:[#allocation9 + $0x10] sm:$0xff]   ;;  %v6405_v38 = vld [vmem:[#allocation9 + $0xf8] sm:$0xff]  }
 0x277   :  { %5477 = vmatprep.subr.bf16.mxu0 %v6347_v46  ;;  %v6377_v46 = vld [vmem:[#allocation6 + $0x558] ss:$28 sps:$4 sm:$0xff]  }
 0x278   :  { %v3583_v1 = vadd.f32 %v6726_v45, %v1500_v12  ;;  %v6400_v45 = vld [vmem:[#allocation9 + $0x48] sm:$0xff]  }
 0x279   :  { %4009 = vmatpush2.bf16.msra.mxu1 %v6344_v48  ;;  %v3717_v48 = vpop.f32.mrf.mxu0 }
 0x27a   :  { %5478 = vmatpush3.bf16.msra.mxu0 %v6348_v49  ;;  %5485 = vmatprep.subr.bf16.mxu1 %v6349_v50  ;;  %v6379_v49 = vld [vmem:[#allocation6 + $0x8d8] ss:$28 sps:$4 sm:$0xff]   ;;  %v3718_v50 = vadd.f32 %v3717_v48, %v3675_v41 }
 0x27b   :  { %5507 = vmatprep.subr.bf16.mxu0 %v6351_v52  ;;  %v3714_v52 = vadd.f32 %v3713_v26, %v3671_v43  ;;  %v6421_v43 = vld [vmem:[#allocation9 + $0x178] sm:$0xff]   ;;  %v6407_v48 = vld [vmem:[#allocation9 + $0xf0] sm:$0xff]  }
 0x27c   :  { %4011 = vmatmul.mubr.bf16.vlgmr.msra.gmra.mxu1 %v6707_v13 }
 0x27d   :  { %4097 = vmatmul.mubr.bf16.vlgmr.msra.gmra.mxu0 %v6682_v29  ;;  %5486 = vmatpush3.bf16.msra.mxu1 %v6350_v37  ;;  %v6360_v29 = vld [vmem:[#allocation6 + $0x830] ss:$28 sps:$4 sm:$0xff]   ;;  %v6380_v37 = vld [vmem:[#allocation6 + $0x718] ss:$28 sps:$4 sm:$0xff]   ;;  %v4229_v0 = vmax.f32 %v3714_v52, 0.0 }
 0x27e   :  { %4137 = vmatprep.mubr.bf16.mxu1 %v6680_v28  ;;  %5508 = vmatpush3.bf16.msra.mxu0 %v6352_v60  ;;  %v6363_v28 = vld [vmem:[#allocation6 + $0x9b8] ss:$28 sps:$4 sm:$0xff]   ;;  %v6382_v60 = vld [vmem:[#allocation9 + $0x78] sm:$0xff]  }
 0x27f   :  { %4178 = vmatprep.mubr.bf16.mxu0 %v6705_v11  ;;  %5487 = vmatprep.subr.bf16.mxu1 %v6353_v62  ;;  %v6364_v11 = vld [vmem:[#allocation6 + $0x7f8] ss:$28 sps:$4 sm:$0xff]   ;;  %v4236_v62 = vmax.f32 %v3718_v50, 0.0 }
 0x280   :  { %5509 = vmatprep.subr.bf16.mxu0 %v6355_v63  ;;  %v6381_v63 = vld [vmem:[#allocation6 + $0xc20] ss:$28 sps:$4 sm:$0xff]  }
 0x281   :  { %5488 = vmatpush3.bf16.msra.mxu1 %v6354_v2  ;;  %v6584_v2 = vmov 0.0   ;;  %v4243_v5 = vpack.c.bf16 %v4236_v62, %v4229_v0  ;;  %v6423_v52 = vld [vmem:[#allocation9 + $0x170] sm:$0xff]  }
 0x282   :  { %5510 = vmatpush3.bf16.msra.mxu0 %v6356_v3  ;;  %5489 = vmatprep.subr.bf16.mxu1 %v6357_v4  ;;  %v6383_v3 = vld [vmem:[#allocation9 + $0x38] sm:$0xff]   ;;  %v6385_v4 = vld [vmem:[#allocation9 + $0x70] sm:$0xff]  }
 0x283   :  { %5511 = vmatprep.subr.bf16.mxu0 %v6359_v6  ;;  %v6384_v6 = vld [vmem:[#allocation6 + $0xbe8] ss:$28 sps:$4 sm:$0xff]  }
 0x285   :  { %5490 = vmatpush3.bf16.msra.mxu1 %v6358_v8  ;;  %v6386_v8 = vld [vmem:[#allocation9 + $0x30] sm:$0xff]  }
 0x286   :  { %5512 = vmatpush3.bf16.msra.mxu0 %v6360_v29  ;;  %5491 = vmatprep.subr.bf16.mxu1 %v6361_v9  ;;  %v6388_v29 = vld [vmem:[#allocation9 + $0x68] sm:$0xff]  }
 0x287   :  { %5513 = vmatprep.subr.bf16.mxu0 %v6363_v28  ;;  %v6387_v9 = vld [vmem:[#allocation6 + $0xbb0] ss:$28 sps:$4 sm:$0xff]   ;;  %v6390_v28 = vld [vmem:[#allocation6 + $0xb78] ss:$28 sps:$4 sm:$0xff]  }
 0x289   :  { %5492 = vmatpush3.bf16.msra.mxu1 %v6362_v14  ;;  %v6394_v14 = vld [vmem:[#allocation9 + $0x58] sm:$0xff]  }
 0x28a   :  { %5514 = vmatpush3.bf16.msra.mxu0 %v6364_v11  ;;  %5493 = vmatprep.subr.bf16.mxu1 %v6365_v15  ;;  %v3587_v11 = vadd.f32 %v6730_v61, %v1500_v12  ;;  %v6393_v15 = vld [vmem:[#allocation6 + $0xb40] ss:$28 sps:$4 sm:$0xff]   ;;  %v3626_v61 = vadd.f32 %v6728_v59, %v3583_v1  ;;  %v6403_v59 = vld [vmem:[#allocation9 + $0x40] sm:$0xff]  }
 0x28b   :  { %5515 = vmatprep.subr.bf16.mxu0 %v6367_v19  ;;  %v6395_v19 = vld [vmem:[#allocation9 + $0x18] sm:$0xff]   ;;  %v6412_v1 = vld [vmem:[#allocation9 + $0xa0] sm:$0xff]  }
 0x28c   :  { %v3630_v22 = vadd.f32 %v6736_v56, %v3587_v11  ;;  %v3669_v27 = vadd.f32 %v6738_v7, %v3626_v61  ;;  %v6399_v56 = vld [vmem:[#allocation6 + $0xad0] ss:$28 sps:$4 sm:$0xff]   ;;  %v1508_v61 = vrot.slane %v6740_v16, %v245_v54  ;;  %v6416_v54 = vld [vmem:[#allocation9 + $0x90] sm:$0xff]  }
 0x28d   :  { %5494 = vmatpush3.bf16.msra.mxu1 %v6366_v21  ;;  %v6397_v21 = vld [vmem:[#allocation9 + $0x50] sm:$0xff]   ;;  %v6404_v7 = vld [vmem:[#allocation9] sm:$0xff]  }
 0x28e   :  { %5516 = vmatpush3.bf16.msra.mxu0 %v6368_v23  ;;  %5495 = vmatprep.subr.bf16.mxu1 %v6369_v24  ;;  %v6396_v23 = vld [vmem:[#allocation6 + $0xb08] ss:$28 sps:$4 sm:$0xff]   ;;  %v3673_v26 = vadd.f32 %v6747_v20, %v3630_v22  ;;  %v3712_v20 = vadd.f32 %v6742_v17, %v3669_v27 }
 0x28f   :  { %5517 = vmatprep.subr.bf16.mxu0 %v6371_v30  ;;  %v6771_v30 = vpop.f32.mrf.mxu0  ;;  %v6406_v17 = vld [vmem:[#allocation9 + $0xb8] sm:$0xff]  }
 0x290   :  { %v3716_v33 = vadd.f32 %v6749_v35, %v3673_v26  ;;  %v1512_v35 = vrot.slane %v6740_v16, %v249_v55  ;;  %v6408_v55 = vld [vmem:[#allocation9 + $0xb0] sm:$0xff]   ;;  %v6413_v22 = vld [vmem:[#allocation9 + $0xd8] sm:$0xff]  }
 0x291   :  { %5496 = vmatpush3.bf16.msra.mxu1 %v6370_v32  ;;  %v6401_v32 = vld [vmem:[#allocation9 + $0x8] sm:$0xff]   ;;  %v6414_v27 = vld [vmem:[#allocation9 + $0x98] sm:$0xff]  }
 0x292   :  { %5518 = vmatpush3.bf16.msra.mxu0 %v6372_v57  ;;  %5497 = vmatprep.subr.bf16.mxu1 %v6373_v34  ;;  %v3756_v57 = vpop.f32.mrf.mxu0  ;;  %v6402_v34 = vld [vmem:[#allocation6 + $0xa98] ss:$28 sps:$4 sm:$0xff]   ;;  %v4235_v41 = vmax.f32 %v3716_v33, 0.0  ;;  %v6430_v33 = vld [vmem:[#allocation9 + $0x118] sm:$0xff]  }
 0x293   :  { %5519 = vmatprep.subr.bf16.mxu0 %v6375_v36 }
 0x295   :  { %5498 = vmatpush3.bf16.msra.mxu1 %v6374_v42  ;;  %v6780_v42 = vpop.f32.mrf.mxu0 }
 0x296   :  { %5520 = vmatpush3.bf16.msra.mxu0 %v6376_v44  ;;  %5499 = vmatprep.subr.bf16.mxu1 %v6377_v46  ;;  %v4228_v44 = vmax.f32 %v3712_v20, 0.0 }
 0x297   :  { %5521 = vmatprep.subr.bf16.mxu0 %v6379_v49  ;;  %v6422_v49 = vld [vmem:[#allocation9 + $0x138] sm:$0xff]  }
 0x298   :  { %v4242_v50 = vpack.c.bf16 %v4235_v41, %v4228_v44  ;;  %v6432_v41 = vld [vmem:[#allocation9 + $0x110] sm:$0xff]  }
 0x299   :  { %5500 = vmatpush3.bf16.msra.mxu1 %v6378_v51  ;;  %v3760_v51 = vpop.f32.mrf.mxu0 }
 0x29a   :  { %5522 = vmatpush3.bf16.msra.mxu0 %v6380_v37  ;;  %5613 = vmatprep.subr.bf16.mxu1 %v6584_v2  ;;  %v3757_v37 = vadd.f32 %v3756_v57, %v1512_v35  ;;  %v6431_v57 = vld [vmem:[#allocation9 + $0x150] sm:$0xff]  }
 0x29b   :  { %5538 = vmatprep.subr.bf16.mxu0 %v6382_v60 }
 0x29c   :  { %4138 = vmatmul.mubr.bf16.vlgmr.msra.gmra.mxu1 %v6676_v25  ;;  %v6389_v25 = vld [vmem:[#allocation9 + $0x28] sm:$0xff]   ;;  %v6766_v24 = vpop.f32.mrf.mxu1 }
 0x29d   :  { %4179 = vmatmul.mubr.bf16.vlgmr.msra.gmra.mxu0 %v6707_v13  ;;  %5614 = vmatpush3.bf16.msra.mxu1 %v6381_v63  ;;  %v6391_v13 = vld [vmem:[#allocation9 + $0x60] sm:$0xff]  }
 0x29e   :  { %5539 = vmatpush3.bf16.msra.mxu0 %v6383_v3  ;;  %4736 = vmatprep.mubr.bf16.mxu0 %v4243_v5  ;;  %v3799_v31 = vpop.f32.mrf.mxu1  ;;  %v6409_v3 = vld [vmem:[#allocation9 + $0xe8] sm:$0xff]  }
 0x29f   :  { %5615 = vmatprep.subr.bf16.mxu1 %v6584_v2  ;;  %5540 = vmatprep.subr.bf16.mxu0 %v6385_v4  ;;  %v3800_v63 = vadd.f32 %v3799_v31, %v3757_v37  ;;  %v6424_v4 = vld [vmem:[#allocation9 + $0x130] sm:$0xff]  }
 0x2a0   :  { %5629 = vmatprep.mubr.msk.bf16.mxu1 %vm6585_vm0, %v6584_v2  ;;  %v6777_v36 = vpop.f32.mrf.mxu1  ;;  %v6438_v37 = vld [vmem:[#allocation9 + $0x1b0] sm:$0xff]  }
 0x2a1   :  { %5616 = vmatpush3.bf16.msra.mxu1 %v6384_v6  ;;  %v6425_v6 = vld [vmem:[#allocation9 + $0x168] sm:$0xff]  }
 0x2a2   :  { %5541 = vmatpush3.bf16.msra.mxu0 %v6386_v8  ;;  %5617 = vmatprep.subr.bf16.mxu1 %v6584_v2  ;;  %v3803_v46 = vpop.f32.mrf.mxu1  ;;  %v3761_v8 = vadd.f32 %v3760_v51, %v1512_v35  ;;  %v6418_v35 = vld [vmem:[#allocation9 + $0x88] sm:$0xff]  }
 0x2a3   :  { %5542 = vmatprep.subr.bf16.mxu0 %v6388_v29 }
 0x2a5   :  { %5618 = vmatpush3.bf16.msra.mxu1 %v6387_v9 }
 0x2a6   :  { %5543 = vmatpush3.bf16.msra.mxu0 %v6389_v25  ;;  %5619 = vmatprep.subr.bf16.mxu1 %v6584_v2 }
 0x2a7   :  { %5544 = vmatprep.subr.bf16.mxu0 %v6391_v13  ;;  %v3804_v13 = vadd.f32 %v3803_v46, %v3761_v8  ;;  %v6420_v46 = vld [vmem:[#allocation9 + $0x80] sm:$0xff]  }
 0x2a9   :  { %5620 = vmatpush3.bf16.msra.mxu1 %v6390_v28  ;;  %v6411_v28 = vld [vmem:[#allocation9 + $0xe0] sm:$0xff]  }
 0x2aa   :  { %5545 = vmatpush3.bf16.msra.mxu0 %v6392_v10  ;;  %5621 = vmatprep.subr.bf16.mxu1 %v6584_v2  ;;  %v6426_v10 = vld [vmem:[#allocation9 + $0x128] sm:$0xff]  }
 0x2ab   :  { %5546 = vmatprep.subr.bf16.mxu0 %v6394_v14  ;;  %v6427_v14 = vld [vmem:[#allocation9 + $0x160] sm:$0xff]  }
 0x2ad   :  { %5622 = vmatpush3.bf16.msra.mxu1 %v6393_v15 }
 0x2ae   :  { %5547 = vmatpush3.bf16.msra.mxu0 %v6395_v19  ;;  %5623 = vmatprep.subr.bf16.mxu1 %v6584_v2 }
 0x2af   :  { %5548 = vmatprep.subr.bf16.mxu0 %v6397_v21 }
 0x2b1   :  { %5624 = vmatpush3.bf16.msra.mxu1 %v6396_v23  ;;  %v6428_v23 = vld [vmem:[#allocation9 + $0x120] sm:$0xff]  }
 0x2b2   :  { %5549 = vmatpush3.bf16.msra.mxu0 %v6398_v58  ;;  %5625 = vmatprep.subr.bf16.mxu1 %v6584_v2  ;;  %v6429_v58 = vld [vmem:[#allocation9 + $0x158] sm:$0xff]  }
 0x2b3   :  { %5550 = vmatprep.subr.bf16.mxu0 %v6400_v45 }
 0x2b5   :  { %5626 = vmatpush3.bf16.msra.mxu1 %v6399_v56  ;;  %v3759_v56 = vadd.f32 %v6780_v42, %v1508_v61  ;;  %v6433_v42 = vld [vmem:[#allocation9 + $0x148] sm:$0xff]  }
 0x2b6   :  { %5551 = vmatpush3.bf16.msra.mxu0 %v6401_v32  ;;  %5627 = vmatprep.subr.bf16.mxu1 %v6584_v2  ;;  %v6415_v32 = vld [vmem:[#allocation9 + $0xd0] sm:$0xff]  }
 0x2b7   :  { %5552 = vmatprep.subr.bf16.mxu0 %v6403_v59  ;;  %v3755_v59 = vadd.f32 %v6771_v30, %v1508_v61  ;;  %v3802_v20 = vadd.f32 %v6777_v36, %v3759_v56  ;;  %v6419_v30 = vld [vmem:[#allocation9 + $0xc0] sm:$0xff]   ;;  %v6434_v36 = vld [vmem:[#allocation9 + $0x108] sm:$0xff]  }
 0x2b9   :  { %5628 = vmatpush3.bf16.msra.mxu1 %v6402_v34  ;;  %v3798_v34 = vadd.f32 %v6766_v24, %v3755_v59 }
 0x2ba   :  { %5553 = vmatpush3.bf16.msra.mxu0 %v6404_v7  ;;  %5560 = vmatprep.subr.bf16.mxu1 %v6405_v38  ;;  %v6417_v38 = vld [vmem:[#allocation9 + $0xc8] sm:$0xff]  }
 0x2bb   :  { %5582 = vmatprep.subr.bf16.mxu0 %v6421_v43 }
 0x2bc   :  { %v6785_v60 = vpop.f32.mrf.mxu1  ;;  %5630 = vmatmul.mubr.bf16.vlgmr.msra.gmra.mxu1 %v6693_v18  ;;  %v6410_v18 = vld [vmem:[#allocation9 + $0xa8] sm:$0xff]  }
 0x2bd   :  { %v6788_v62 = vpop.f32.mrf.mxu0  ;;  %4737 = vmatmul.mubr.bf16.vlgmr.msra.gmra.mxu0 %v4242_v50  ;;  %5561 = vmatpush3.bf16.msra.mxu1 %v6406_v17  ;;  %v6435_v17 = vld [vmem:[#allocation9 + $0x140] sm:$0xff]  }
 0x2be   :  { %v3885_v0 = vpop.f32.mrf.mxu1  ;;  %5562 = vmatprep.subr.bf16.mxu1 %v6407_v48  ;;  %5583 = vmatpush3.bf16.msra.mxu0 %v6422_v49  ;;  %v3841_v43 = vadd.f32 %v6788_v62, %v3798_v34  ;;  %v6436_v49 = vld [vmem:[#allocation9 + $0x100] sm:$0xff]  }
 0x2bf   :  { %v3842_v5 = vpop.f32.mrf.mxu0  ;;  %5584 = vmatprep.subr.bf16.mxu0 %v6423_v52  ;;  %v6437_v52 = vld [vmem:[#allocation9 + $0x1b8] sm:$0xff]   ;;  %v6440_v62 = vld [vmem:[#allocation9 + $0x1a0] sm:$0xff]  }
 0x2c0   :  { %v3843_v29 = vadd.f32 %v3842_v5, %v3800_v63  ;;  %v3887_v9 = vpop.f32.mrf.mxu1  ;;  %v3884_v24 = vadd.f32 %v6785_v60, %v3841_v43  ;;  %v6439_v60 = vld [vmem:[#allocation9 + $0x1a8] sm:$0xff]   ;;  %v6442_v63 = vld [vmem:[#allocation9 + $0x190] sm:$0xff]  }
 0x2c1   :  { %v3844_v25 = vpop.f32.mrf.mxu0  ;;  %5563 = vmatpush3.bf16.msra.mxu1 %v6408_v55  ;;  %v6441_v55 = vld [vmem:[#allocation9 + $0x198] sm:$0xff]  }
 0x2c2   :  { %5564 = vmatprep.subr.bf16.mxu1 %v6409_v3  ;;  %5585 = vmatpush3.bf16.msra.mxu0 %v6424_v4  ;;  %v3886_v11 = vadd.f32 %v3885_v0, %v3843_v29  ;;  %v3889_v19 = vpop.f32.mrf.mxu1  ;;  %v3845_v7 = vadd.f32 %v3844_v25, %v3802_v20  ;;  %v4230_v50 = vmax.f32 %v3884_v24, 0.0  ;;  %v6443_v0 = vld [vmem:[#allocation9 + $0x188] sm:$0xff]   ;;  %v6444_v3 = vld [vmem:[#allocation9 + $0x180] sm:$0xff]   ;;  %v1516_v25 = vrot.slane %v6740_v16, %v253_v39 }
 0x2c3   :  { %v3846_v12 = vpop.f32.mrf.mxu0  ;;  %5586 = vmatprep.subr.bf16.mxu0 %v6425_v6 }
 0x2c4   :  { %v3847_v15 = vadd.f32 %v3846_v12, %v3804_v13  ;;  %v4231_v26 = vmax.f32 %v3886_v11, 0.0  ;;  %v3888_v44 = vadd.f32 %v3887_v9, %v3845_v7  ;;  %v1520_v9 = vrot.slane %v6740_v16, %v257_v40 }
 0x2c5   :  { %5565 = vmatpush3.bf16.msra.mxu1 %v6410_v18 }
 0x2c6   :  { %v3890_v21 = vadd.f32 %v3889_v19, %v3847_v15  ;;  %5566 = vmatprep.subr.bf16.mxu1 %v6411_v28  ;;  %5587 = vmatpush3.bf16.msra.mxu0 %v6426_v10  ;;  %v4237_v48 = vmax.f32 %v3888_v44, 0.0 }
 0x2c7   :  { %5588 = vmatprep.subr.bf16.mxu0 %v6427_v14 }
 0x2c8   :  { %v4238_v45 = vmax.f32 %v3890_v21, 0.0  ;;  %v4244_v51 = vpack.c.bf16 %v4237_v48, %v4230_v50  ;;  %v1524_v48 = vrot.slane %v6740_v16, %v261_v47 }
 0x2c9   :  { %5567 = vmatpush3.bf16.msra.mxu1 %v6412_v1 }
 0x2ca   :  { %5568 = vmatprep.subr.bf16.mxu1 %v6413_v22  ;;  %v4245_v31 = vpack.c.bf16 %v4238_v45, %v4231_v26  ;;  %5589 = vmatpush3.bf16.msra.mxu0 %v6428_v23 }
 0x2cb   :  { %5590 = vmatprep.subr.bf16.mxu0 %v6429_v58 }
 0x2cc   :  { %4777 = vmatprep.mubr.bf16.mxu1 %v4245_v31 }
 0x2cd   :  { %5569 = vmatpush3.bf16.msra.mxu1 %v6414_v27 }
 0x2ce   :  { %5570 = vmatprep.subr.bf16.mxu1 %v6415_v32  ;;  %5591 = vmatpush3.bf16.msra.mxu0 %v6430_v33 }
 0x2cf   :  { %5592 = vmatprep.subr.bf16.mxu0 %v6431_v57 }
 0x2d1   :  { %5571 = vmatpush3.bf16.msra.mxu1 %v6416_v54 }
 0x2d2   :  { %5572 = vmatprep.subr.bf16.mxu1 %v6417_v38  ;;  %5593 = vmatpush3.bf16.msra.mxu0 %v6432_v41 }
 0x2d3   :  { %5594 = vmatprep.subr.bf16.mxu0 %v6433_v42 }
 0x2d5   :  { %5573 = vmatpush3.bf16.msra.mxu1 %v6418_v35 }
 0x2d6   :  { %5574 = vmatprep.subr.bf16.mxu1 %v6419_v30  ;;  %5595 = vmatpush3.bf16.msra.mxu0 %v6434_v36 }
 0x2d7   :  { %5596 = vmatprep.subr.bf16.mxu0 %v6435_v17 }
 0x2d9   :  { %5575 = vmatpush3.bf16.msra.mxu1 %v6420_v46 }
 0x2da   :  { %5597 = vmatpush3.bf16.msra.mxu0 %v6436_v49  ;;  %5633 = vmatprep.subr.bf16.mxu1 %v6584_v2 }
 0x2dc   :  { %4778 = vmatmul.mubr.bf16.vlgmr.msra.gmra.mxu1 %v4244_v51 }
 0x2dd   :  { %5649 = vmatprep.mubr.msk.bf16.mxu1 %vm6585_vm0, %v6584_v2  ;;  %5634 = vmatpush3.bf16.msra.mxu1 %v6437_v52 }
 0x2de   :  { %5635 = vmatprep.subr.bf16.mxu1 %v6584_v2 }
 0x2e1   :  { %5636 = vmatpush3.bf16.msra.mxu1 %v6438_v37 }
 0x2e2   :  { %5637 = vmatprep.subr.bf16.mxu1 %v6584_v2 }
 0x2e5   :  { %5638 = vmatpush3.bf16.msra.mxu1 %v6439_v60 }
 0x2e6   :  { %5639 = vmatprep.subr.bf16.mxu1 %v6584_v2 }
 0x2e9   :  { %5640 = vmatpush3.bf16.msra.mxu1 %v6440_v62 }
 0x2ea   :  { %5641 = vmatprep.subr.bf16.mxu1 %v6584_v2 }
 0x2ed   :  { %5642 = vmatpush3.bf16.msra.mxu1 %v6441_v55 }
 0x2ee   :  { %5643 = vmatprep.subr.bf16.mxu1 %v6584_v2 }
 0x2f1   :  { %5644 = vmatpush3.bf16.msra.mxu1 %v6442_v63 }
 0x2f2   :  { %5645 = vmatprep.subr.bf16.mxu1 %v6584_v2 }
 0x2f5   :  { %5646 = vmatpush3.bf16.msra.mxu1 %v6443_v0 }
 0x2f6   :  { %5647 = vmatprep.subr.bf16.mxu1 %v6584_v2 }
 0x2f9   :  { %5648 = vmatpush3.bf16.msra.mxu1 %v6444_v3 }
 0x2fc   :  { %v3926_v5 = vpop.f32.mrf.mxu1 }
 0x2fd   :  { %v3969_v4 = vpop.f32.mrf.mxu0  ;;  %v3927_v2 = vadd.f32 %v3926_v5, %v1516_v25 }
 0x2fe   :  { %v3928_v8 = vpop.f32.mrf.mxu1 }
 0x2ff   :  { %v3971_v6 = vpop.f32.mrf.mxu0  ;;  %v3929_v10 = vadd.f32 %v3928_v8, %v1520_v9  ;;  %v3970_v21 = vadd.f32 %v3969_v4, %v3927_v2 }
 0x300   :  { %v3930_v18 = vpop.f32.mrf.mxu1 }
 0x301   :  { %v3973_v29 = vpop.f32.mrf.mxu0  ;;  %v3931_v14 = vadd.f32 %v3930_v18, %v1516_v25  ;;  %v3972_v19 = vadd.f32 %v3971_v6, %v3929_v10 }
 0x302   :  { %v3932_v12 = vpop.f32.mrf.mxu1 }
 0x303   :  { %v3975_v13 = vpop.f32.mrf.mxu0  ;;  %v3933_v1 = vadd.f32 %v3932_v12, %v1520_v9  ;;  %v3974_v23 = vadd.f32 %v3973_v29, %v3931_v14 }
 0x305   :  { %v3976_v45 = vadd.f32 %v3975_v13, %v3933_v1 }
 0x31d   :  { %v4055_v28 = vpop.f32.mrf.mxu0 }
 0x31f   :  { %v4057_v11 = vpop.f32.mrf.mxu0 }
 0x321   :  { %v4059_v40 = vpop.f32.mrf.mxu0 }
 0x323   :  { %v4061_v33 = vpop.f32.mrf.mxu0 }
 0x33c   :  { %v4012_v15 = vpop.f32.mrf.mxu1 }
 0x33d   :  { %v4013_v61 = vadd.f32 %v4012_v15, %v3970_v21  ;;  %v5479_v42 = vpop.f32.mrf.mxu0 }
 0x33e   :  { %v4014_v22 = vpop.f32.mrf.mxu1 }
 0x33f   :  { %v4015_v58 = vadd.f32 %v4014_v22, %v3972_v19  ;;  %v4056_v57 = vadd.f32 %v4055_v28, %v4013_v61  ;;  %v5480_v43 = vpop.f32.mrf.mxu0 }
 0x340   :  { %v4016_v26 = vpop.f32.mrf.mxu1  ;;  %v5481_v49 = vadd.f32 %v5480_v43, %v5479_v42 }
 0x341   :  { %v4017_v39 = vadd.f32 %v4016_v26, %v3974_v23  ;;  %v4058_v56 = vadd.f32 %v4057_v11, %v4015_v58  ;;  %v4232_v7 = vmax.f32 %v4056_v57, 0.0  ;;  %v5482_v35 = vpop.f32.mrf.mxu0  ;;  %v5384_v23 = vld [vmem:[#allocation10] ss:$0 sm:$0xff] }
 0x342   :  { %v4018_v27 = vpop.f32.mrf.mxu1  ;;  %v4099_v60 = vadd.f32 %v5481_v49, %v1524_v48 }
 0x343   :  { %v4060_v31 = vadd.f32 %v4059_v40, %v4017_v39  ;;  %v4019_v32 = vadd.f32 %v4018_v27, %v3976_v45  ;;  %v4233_v54 = vmax.f32 %v4058_v56, 0.0  ;;  %v5483_v30 = vpop.f32.mrf.mxu0 }
 0x344   :  { %v5484_v52 = vadd.f32 %v5483_v30, %v5482_v35 }
 0x345   :  { %v4062_v59 = vadd.f32 %v4061_v33, %v4019_v32  ;;  %v4239_v20 = vmax.f32 %v4060_v31, 0.0 }
 0x346   :  { %v4102_v63 = vadd.f32 %v5484_v52, %v1524_v48 }
 0x347   :  { %v4240_v34 = vmax.f32 %v4062_v59, 0.0  ;;  %v4246_v41 = vpack.c.bf16 %v4239_v20, %v4232_v7 }
 0x349   :  { %v4247_v38 = vpack.c.bf16 %v4240_v34, %v4233_v54 }
 0x34b   :  { %4818 = vmatprep.mubr.bf16.mxu0 %v4247_v38 }
 0x34c   :  { %4819 = vmatmul.mubr.bf16.vlgmr.msra.gmra.mxu0 %v4246_v41 }
 0x35c   :  { %v5501_v44 = vpop.f32.mrf.mxu1 }
 0x35d   :  { %v5523_v36 = vpop.f32.mrf.mxu0 }
 0x35e   :  { %v5502_v17 = vpop.f32.mrf.mxu1 }
 0x35f   :  { %v5524_v24 = vpop.f32.mrf.mxu0  ;;  %v5503_v37 = vadd.f32 %v5502_v17, %v5501_v44 }
 0x360   :  { %v5504_v46 = vpop.f32.mrf.mxu1  ;;  %v5525_v3 = vadd.f32 %v5524_v24, %v5523_v36 }
 0x361   :  { %v5526_v50 = vpop.f32.mrf.mxu0  ;;  %v4140_v0 = vadd.f32 %v5503_v37, %v4099_v60 }
 0x362   :  { %v5505_v51 = vpop.f32.mrf.mxu1 }
 0x363   :  { %v5506_v62 = vadd.f32 %v5505_v51, %v5504_v46  ;;  %v5527_v55 = vpop.f32.mrf.mxu0  ;;  %v4181_v8 = vadd.f32 %v5525_v3, %v4140_v0 }
 0x364   :  { %v5528_v5 = vadd.f32 %v5527_v55, %v5526_v50 }
 0x365   :  { %v4143_v4 = vadd.f32 %v5506_v62, %v4102_v63 }
 0x367   :  { %v4184_v53 = vadd.f32 %v5528_v5, %v4143_v4 }
 0x37c   :  { %v4221_v6 = vpop.f32.mrf.mxu1 }
 0x37d   :  { %v4222_v9 = vadd.f32 %v4221_v6, %v4181_v8  ;;  %v5554_v10 = vpop.f32.mrf.mxu0 }
 0x37e   :  { %v5631_v29 = vpop.f32.mrf.mxu1 }
 0x37f   :  { %v4234_v18 = vmax.f32 %v4222_v9, 0.0  ;;  %v5555_v2 = vpop.f32.mrf.mxu0 }
 0x380   :  { %v4224_v25 = vpop.f32.mrf.mxu1  ;;  %v5556_v22 = vadd.f32 %v5555_v2, %v5554_v10 }
 0x381   :  { %v4225_v47 = vadd.f32 %v4224_v25, %v4184_v53  ;;  %v5557_v12 = vpop.f32.mrf.mxu0 }
 0x382   :  { %v5632_v16 = vpop.f32.mrf.mxu1  ;;  %v4739_v26 = vadd.f32 %v5556_v22, %v5384_v23 }
 0x383   :  { %v4241_v13 = vmax.f32 %v4225_v47, 0.0  ;;  %v5558_v14 = vpop.f32.mrf.mxu0 }
 0x384   :  { %v5559_v45 = vadd.f32 %v5558_v14, %v5557_v12 }
 0x385   :  { %v4248_v28 = vpack.c.bf16 %v4241_v13, %v4234_v18 }
 0x386   :  { %v4742_v32 = vadd.f32 %v5559_v45, %v5384_v23 }
 0x387   :  { %5650 = vmatmul.mubr.bf16.vlgmr.msra.gmra.mxu1 %v4248_v28 }
 0x39c   :  { %v5576_v11 = vpop.f32.mrf.mxu1 }
 0x39e   :  { %v5577_v19 = vpop.f32.mrf.mxu1 }
 0x39f   :  { %v5578_v40 = vadd.f32 %v5577_v19, %v5576_v11 }
 0x3a0   :  { %v5579_v21 = vpop.f32.mrf.mxu1 }
 0x3a1   :  { %v4780_v56 = vadd.f32 %v5578_v40, %v4739_v26 }
 0x3a2   :  { %v5580_v61 = vpop.f32.mrf.mxu1 }
 0x3a3   :  { %v5581_v31 = vadd.f32 %v5580_v61, %v5579_v21 }
 0x3a5   :  { %v4783_v20 = vadd.f32 %v5581_v31, %v4742_v32 }
 0x40c   :  { %v5598_v15 = vpop.f32.mrf.mxu0 }
 0x40e   :  { %v5599_v1 = vpop.f32.mrf.mxu0 }
 0x40f   :  { %v5600_v39 = vadd.f32 %v5599_v1, %v5598_v15 }
 0x410   :  { %v5601_v58 = vpop.f32.mrf.mxu0 }
 0x411   :  { %v4821_v57 = vadd.f32 %v5600_v39, %v4780_v56 }
 0x412   :  { %v5602_v27 = vpop.f32.mrf.mxu0 }
 0x413   :  { %v5603_v33 = vadd.f32 %v5602_v27, %v5601_v58 }
 0x415   :  { %v4824_v7 = vadd.f32 %v5603_v33, %v4783_v20 }
 0x447   :  { %v4861_v59 = vpop.f32.mrf.mxu1 }
 0x448   :  { %v4862_v54 = vadd.f32 %v4861_v59, %v4821_v57 }
 0x449   :  { %v5651_v34 = vpop.f32.mrf.mxu1 }
 0x44a   :  { %4868 = vst [vmem:[%s6831_s7] sm:$0xff] %v4862_v54 }
 0x44b   :  { %v4864_v38 = vpop.f32.mrf.mxu1 }
 0x44c   :  { %v4865_v41 = vadd.f32 %v4864_v38, %v4824_v7 }
 0x44d   :  { %v5652_v42 = vpop.f32.mrf.mxu1 }
 0x44e   :  { %4869 = vst [vmem:[%s6831_s7 + $0x8] sm:$0xff] %v4865_v41 }
 0x44f   :  { %4874 = vsyncpa [#allocation3], 1 }
 0x450   :  { %4875 = vsyncpa [#allocation5], 1 }
 0x451   :  { %4876 = vsyncpa [#allocation8], 1 }
 0x452   :  { %4877 = vsyncpa [#allocation11], 1 }

</bundles_post_ra>
